<compile_context>
chip_gen: v7x
topology: tpu7x:2x2x1
jax: 0.10.0
libtpu: 0.0.40
codegen_flags: <defaults>
</compile_context>

<pallas_src>
import jax
import jax.numpy as jnp
from jax.experimental import pallas as pl
from jax.experimental.pallas import tpu as pltpu


# ----------------------------------------------------------------------------- kernel

def _make_fflstm_kernel(T, B_pad, H, num_layers):
    """Build the kernel closure for fixed (static) T, B_pad, H, num_layers."""

    def kernel(*refs):
        # refs: x_flat, (w_ih, w_hh, bias) * num_layers, fc_w, fc_b,
        #       out_ref, xw_scratch, seq_scratch
        x_ref = refs[0]                                   # (T*B_pad, D)   bf16
        layer_refs = []
        idx = 1
        for _ in range(num_layers):
            layer_refs.append((refs[idx], refs[idx + 1], refs[idx + 2]))
            idx += 3
        fc_w_ref, fc_b_ref = refs[idx], refs[idx + 1]     # (H, F) bf16, (1, F) f32
        out_ref = refs[idx + 2]                           # (B_pad, F)     f32
        xw_ref = refs[idx + 3]                            # (T*B_pad, 4H)  f32
        seq_ref = refs[idx + 4]                           # (T*B_pad, H)   bf16

        h = jnp.zeros((B_pad, H), jnp.float32)
        for layer in range(num_layers):
            w_ih = layer_refs[layer][0][...]              # (D_l, 4H) bf16
            w_hh = layer_refs[layer][1][...]              # (H, 4H)   bf16
            bias = layer_refs[layer][2][...]              # (1, 4H)   f32 (b_ih+b_hh)

            # Hoisted input projection: one batched MXU matmul for the whole
            # sequence of this layer (+ bias), off the recurrent critical path.
            inp = x_ref[...] if layer == 0 else seq_ref[...]
            xw_ref[...] = (jnp.dot(inp, w_ih, preferred_element_type=jnp.float32)
                           + bias)

            write_seq = layer != num_layers - 1

            h = jnp.zeros((B_pad, H), jnp.float32)
            c = jnp.zeros((B_pad, H), jnp.float32)
            # Short static trip count: fully unrolled; h/c are overwritten each
            # step and per-step outputs go straight to VMEM scratch, so live
            # ranges stay bounded.
            for t in range(T):
                row = t * B_pad
                gates = xw_ref[row:row + B_pad, :] + jnp.dot(
                    h.astype(jnp.bfloat16), w_hh,
                    preferred_element_type=jnp.float32)
                # Full-width activations on the (B_pad, 4H=128) slab, then
                # slice i/f/g/o (torch.nn.LSTM gate order).
                sig = jax.nn.sigmoid(gates)
                tnh = jnp.tanh(gates)
                i_g = sig[:, 0 * H:1 * H]
                f_g = sig[:, 1 * H:2 * H]
                g_g = tnh[:, 2 * H:3 * H]
                o_g = sig[:, 3 * H:4 * H]
                c = f_g * c + i_g * g_g
                h = o_g * jnp.tanh(c)
                if write_seq:
                    seq_ref[row:row + B_pad, :] = h.astype(jnp.bfloat16)

        # r_out[:, -1, :] @ fc2.weight.T + fc2.bias
        out_ref[...] = (jnp.dot(h.astype(jnp.bfloat16), fc_w_ref[...],
                                preferred_element_type=jnp.float32)
                        + fc_b_ref[...])

    return kernel


# ---------------------------------------------------------------------- param prep

def prepare_params(lstm_params, fc_w, fc_b):
    """One-time weight prep: transpose, fuse biases, cast matmul operands to bf16."""
    prepped = []
    for p in lstm_params:
        prepped.append(jnp.transpose(p["w_ih"]).astype(jnp.bfloat16))   # (D_l, 4H)
        prepped.append(jnp.transpose(p["w_hh"]).astype(jnp.bfloat16))   # (H, 4H)
        prepped.append((p["b_ih"] + p["b_hh"]).reshape(1, -1).astype(jnp.float32))
    prepped.append(jnp.transpose(fc_w).astype(jnp.bfloat16))            # (H, F)
    prepped.append(fc_b.reshape(1, -1).astype(jnp.float32))             # (1, F)
    return tuple(prepped)


# ---------------------------------------------------------------------------- wrapper

def fflstm_encoder1_forward(x, prepped):
    """x: (B, T, D) float32, batch_first (PyTorch convention). Returns (B, fc2_size)."""
    B, T, D = x.shape
    num_layers = (len(prepped) - 2) // 3
    H = prepped[1].shape[0]            # w_hh stored as (H, 4H)
    F = prepped[-2].shape[1]           # fc_w stored as (H, F)

    # Pad batch to a sublane multiple so every matmul/store is full-tile.
    B_pad = ((B + 7) // 8) * 8
    x_tm = jnp.transpose(x, (1, 0, 2)).astype(jnp.bfloat16)      # time-major (T, B, D)
    if B_pad != B:
        x_tm = jnp.pad(x_tm, ((0, 0), (0, B_pad - B), (0, 0)))
    x_flat = x_tm.reshape(T * B_pad, D)

    kernel = _make_fflstm_kernel(T, B_pad, H, num_layers)

    out_pad = pl.pallas_call(
        kernel,
        out_shape=jax.ShapeDtypeStruct((B_pad, F), jnp.float32),
        in_specs=[pl.BlockSpec(memory_space=pltpu.MemorySpace.VMEM)]
                 * (1 + len(prepped)),
        out_specs=pl.BlockSpec(memory_space=pltpu.MemorySpace.VMEM),
        scratch_shapes=[pltpu.VMEM((T * B_pad, 4 * H), jnp.float32),   # xw buffer
                        pltpu.VMEM((T * B_pad, H), jnp.bfloat16)],     # layer output seq
    )(x_flat, *prepped)
    return out_pad[:B]
    # TODO(synk): for large B on v7x, add a grid over the batch dimension with
    # dimension_semantics=("parallel",) to use both TensorCores.


# ----------------------------------------------------------------- pure-JAX reference

def fflstm_encoder1_reference(x, lstm_params, fc_w, fc_b):
    B, T, D = x.shape
    H = lstm_params[0]["w_hh"].shape[1]
    seq = x.astype(jnp.float32)
    for p in lstm_params:
        w_ih, w_hh = p["w_ih"], p["w_hh"]
        b = (p["b_ih"] + p["b_hh"])[None, :]
        h = jnp.zeros((B, H), jnp.float32)
        c = jnp.zeros((B, H), jnp.float32)
        outs = []
        for t in range(T):
            g = seq[:, t, :] @ w_ih.T + h @ w_hh.T + b
            i_g = jax.nn.sigmoid(g[:, 0 * H:1 * H])
            f_g = jax.nn.sigmoid(g[:, 1 * H:2 * H])
            g_g = jnp.tanh(g[:, 2 * H:3 * H])
            o_g = jax.nn.sigmoid(g[:, 3 * H:4 * H])
            c = f_g * c + i_g * g_g
            h = o_g * jnp.tanh(c)
            outs.append(h)
        seq = jnp.stack(outs, axis=1)
    return seq[:, -1, :] @ fc_w.T + fc_b[None, :]


# ------------------------------------------------------------------------------- main

def _uniform(key, shape, bound):
    return jax.random.uniform(key, shape, jnp.float32, minval=-bound, maxval=bound)


if __name__ == "__main__":
    # Module hyper-parameters (small, consistent with the forward pass).
    lstm_input_size = 16
    lstm_hidden_size = 32
    lstm_num_layers = 2
    fc2_size = 16
    B, T = 2, 8

    key = jax.random.PRNGKey(0)
    k_x, k_p = jax.random.split(key)

    # Deterministic parameter init (PyTorch-style uniform(-1/sqrt(H), 1/sqrt(H))).
    bound_lstm = 1.0 / (lstm_hidden_size ** 0.5)
    lstm_params = []
    for layer in range(lstm_num_layers):
        d_in = lstm_input_size if layer == 0 else lstm_hidden_size
        k_p, k1, k2, k3, k4 = jax.random.split(k_p, 5)
        lstm_params.append({
            "w_ih": _uniform(k1, (4 * lstm_hidden_size, d_in), bound_lstm),
            "w_hh": _uniform(k2, (4 * lstm_hidden_size, lstm_hidden_size), bound_lstm),
            "b_ih": _uniform(k3, (4 * lstm_hidden_size,), bound_lstm),
            "b_hh": _uniform(k4, (4 * lstm_hidden_size,), bound_lstm),
        })
    bound_fc = 1.0 / (lstm_hidden_size ** 0.5)
    k_p, kw, kb = jax.random.split(k_p, 3)
    fc_w = _uniform(kw, (fc2_size, lstm_hidden_size), bound_fc)
    fc_b = _uniform(kb, (fc2_size,), bound_fc)

    x = jax.random.normal(k_x, (B, T, lstm_input_size), jnp.float32)

    # One-time parameter prep (transposes / bias fuse / bf16 cast) outside the
    # forward path, then a jitted forward.
    prepped = prepare_params(lstm_params, fc_w, fc_b)
    forward = jax.jit(fflstm_encoder1_forward)

    out = forward(x, prepped)
    out = jax.block_until_ready(out)

    ref = fflstm_encoder1_reference(x, lstm_params, fc_w, fc_b)
    assert out.shape == (B, fc2_size)
    # bf16 MXU operands (f32 accumulation) -> loosened tolerance vs the f32 reference.
    assert jnp.allclose(out, ref, atol=2e-2, rtol=2e-2), "mismatch vs reference"

    print("KERNEL_OK")
</pallas_src>

<mosaic_0001>
module attributes {stable_mosaic.version = 11 : i64} {
  func.func @kernel(%arg0: memref<64x16xbf16, #tpu.memory_space<vmem>>, %arg1: memref<16x128xbf16, #tpu.memory_space<vmem>>, %arg2: memref<32x128xbf16, #tpu.memory_space<vmem>>, %arg3: memref<1x128xf32, #tpu.memory_space<vmem>>, %arg4: memref<32x128xbf16, #tpu.memory_space<vmem>>, %arg5: memref<32x128xbf16, #tpu.memory_space<vmem>>, %arg6: memref<1x128xf32, #tpu.memory_space<vmem>>, %arg7: memref<32x16xbf16, #tpu.memory_space<vmem>>, %arg8: memref<1x16xf32, #tpu.memory_space<vmem>>, %arg9: memref<8x16xf32, #tpu.memory_space<vmem>>, %arg10: memref<64x128xf32, #tpu.memory_space<vmem>>, %arg11: memref<64x32xbf16, #tpu.memory_space<vmem>>) attributes {dimension_semantics = [], scalar_prefetch = 0 : i64, scratch_operands = 2 : i64, tpu.core_type = #tpu.core_type<tc>} {
    %c0 = arith.constant 0 : index
    %c0_0 = arith.constant 0 : index
    %0 = vector.load %arg1[%c0, %c0_0] : memref<16x128xbf16, #tpu.memory_space<vmem>>, vector<16x128xbf16>
    %c0_1 = arith.constant 0 : index
    %c0_2 = arith.constant 0 : index
    %1 = vector.load %arg2[%c0_1, %c0_2] : memref<32x128xbf16, #tpu.memory_space<vmem>>, vector<32x128xbf16>
    %c0_3 = arith.constant 0 : index
    %c0_4 = arith.constant 0 : index
    %2 = vector.load %arg3[%c0_3, %c0_4] : memref<1x128xf32, #tpu.memory_space<vmem>>, vector<1x128xf32>
    %c0_5 = arith.constant 0 : index
    %c0_6 = arith.constant 0 : index
    %3 = vector.load %arg0[%c0_5, %c0_6] : memref<64x16xbf16, #tpu.memory_space<vmem>>, vector<64x16xbf16>
    %cst = arith.constant dense<0.000000e+00> : vector<64x128xf32>
    %4 = tpu.matmul %3, %0, %cst {dimension_numbers = #tpu.dot_dimension_numbers<[1], [0], [0], [1], [0, 0, 1, 1], [], []>} : vector<64x16xbf16>, vector<16x128xbf16>, vector<64x128xf32> -> vector<64x128xf32>
    %5 = vector.broadcast %2 : vector<1x128xf32> to vector<64x128xf32>
    %6 = arith.addf %4, %5 : vector<64x128xf32>
    %c0_7 = arith.constant 0 : index
    %c0_8 = arith.constant 0 : index
    %7 = vector.load %arg10[%c0_7, %c0_8] : memref<64x128xf32, #tpu.memory_space<vmem>>, vector<64x128xf32>
    tpu.vector_store %arg10[%c0_7, %c0_8], %6 {strides = array<i32>} : memref<64x128xf32, #tpu.memory_space<vmem>>, vector<64x128xf32>,
    %cst_9 = arith.constant 0.000000e+00 : f32
    %8 = vector.broadcast %cst_9 : f32 to vector<8x32xf32>
    %cst_10 = arith.constant 0.000000e+00 : f32
    %9 = vector.broadcast %cst_10 : f32 to vector<8x32xf32>
    %c0_11 = arith.constant 0 : index
    %c0_12 = arith.constant 0 : index
    %10 = vector.load %arg10[%c0_11, %c0_12] : memref<64x128xf32, #tpu.memory_space<vmem>>, vector<8x128xf32>
    %11 = arith.truncf %8 : vector<8x32xf32> to vector<8x32xbf16>
    %cst_13 = arith.constant dense<0.000000e+00> : vector<8x128xf32>
    %12 = tpu.matmul %11, %1, %cst_13 {dimension_numbers = #tpu.dot_dimension_numbers<[1], [0], [0], [1], [0, 0, 1, 1], [], []>} : vector<8x32xbf16>, vector<32x128xbf16>, vector<8x128xf32> -> vector<8x128xf32>
    %13 = arith.addf %10, %12 : vector<8x128xf32>
    %14 = arith.negf %13 : vector<8x128xf32>
    %15 = math.exp %14 : vector<8x128xf32>
    %cst_14 = arith.constant 1.000000e+00 : f32
    %16 = vector.broadcast %cst_14 : f32 to vector<8x128xf32>
    %17 = arith.addf %16, %15 : vector<8x128xf32>
    %18 = arith.divf %16, %17 : vector<8x128xf32>
    %19 = math.tanh %13 : vector<8x128xf32>
    %20 = vector.extract_strided_slice %18 {offsets = [0, 0], sizes = [8, 32], strides = [1, 1]} : vector<8x128xf32> to vector<8x32xf32>
    %21 = vector.extract_strided_slice %18 {offsets = [0, 32], sizes = [8, 32], strides = [1, 1]} : vector<8x128xf32> to vector<8x32xf32>
    %22 = vector.extract_strided_slice %19 {offsets = [0, 64], sizes = [8, 32], strides = [1, 1]} : vector<8x128xf32> to vector<8x32xf32>
    %23 = vector.extract_strided_slice %18 {offsets = [0, 96], sizes = [8, 32], strides = [1, 1]} : vector<8x128xf32> to vector<8x32xf32>
    %24 = arith.mulf %21, %9 : vector<8x32xf32>
    %25 = arith.mulf %20, %22 : vector<8x32xf32>
    %26 = arith.addf %24, %25 : vector<8x32xf32>
    %27 = math.tanh %26 : vector<8x32xf32>
    %28 = arith.mulf %23, %27 : vector<8x32xf32>
    %29 = arith.truncf %28 : vector<8x32xf32> to vector<8x32xbf16>
    %c0_15 = arith.constant 0 : index
    %c0_16 = arith.constant 0 : index
    %30 = vector.load %arg11[%c0_15, %c0_16] : memref<64x32xbf16, #tpu.memory_space<vmem>>, vector<8x32xbf16>
    tpu.vector_store %arg11[%c0_15, %c0_16], %29 {strides = array<i32>} : memref<64x32xbf16, #tpu.memory_space<vmem>>, vector<8x32xbf16>,
    %c8 = arith.constant 8 : index
    %c0_17 = arith.constant 0 : index
    %31 = vector.load %arg10[%c8, %c0_17] : memref<64x128xf32, #tpu.memory_space<vmem>>, vector<8x128xf32>
    %32 = arith.truncf %28 : vector<8x32xf32> to vector<8x32xbf16>
    %cst_18 = arith.constant dense<0.000000e+00> : vector<8x128xf32>
    %33 = tpu.matmul %32, %1, %cst_18 {dimension_numbers = #tpu.dot_dimension_numbers<[1], [0], [0], [1], [0, 0, 1, 1], [], []>} : vector<8x32xbf16>, vector<32x128xbf16>, vector<8x128xf32> -> vector<8x128xf32>
    %34 = arith.addf %31, %33 : vector<8x128xf32>
    %35 = arith.negf %34 : vector<8x128xf32>
    %36 = math.exp %35 : vector<8x128xf32>
    %cst_19 = arith.constant 1.000000e+00 : f32
    %37 = vector.broadcast %cst_19 : f32 to vector<8x128xf32>
    %38 = arith.addf %37, %36 : vector<8x128xf32>
    %39 = arith.divf %37, %38 : vector<8x128xf32>
    %40 = math.tanh %34 : vector<8x128xf32>
    %41 = vector.extract_strided_slice %39 {offsets = [0, 0], sizes = [8, 32], strides = [1, 1]} : vector<8x128xf32> to vector<8x32xf32>
    %42 = vector.extract_strided_slice %39 {offsets = [0, 32], sizes = [8, 32], strides = [1, 1]} : vector<8x128xf32> to vector<8x32xf32>
    %43 = vector.extract_strided_slice %40 {offsets = [0, 64], sizes = [8, 32], strides = [1, 1]} : vector<8x128xf32> to vector<8x32xf32>
    %44 = vector.extract_strided_slice %39 {offsets = [0, 96], sizes = [8, 32], strides = [1, 1]} : vector<8x128xf32> to vector<8x32xf32>
    %45 = arith.mulf %42, %26 : vector<8x32xf32>
    %46 = arith.mulf %41, %43 : vector<8x32xf32>
    %47 = arith.addf %45, %46 : vector<8x32xf32>
    %48 = math.tanh %47 : vector<8x32xf32>
    %49 = arith.mulf %44, %48 : vector<8x32xf32>
    %50 = arith.truncf %49 : vector<8x32xf32> to vector<8x32xbf16>
    %c8_20 = arith.constant 8 : index
    %c0_21 = arith.constant 0 : index
    %51 = vector.load %arg11[%c8_20, %c0_21] : memref<64x32xbf16, #tpu.memory_space<vmem>>, vector<8x32xbf16>
    tpu.vector_store %arg11[%c8_20, %c0_21], %50 {strides = array<i32>} : memref<64x32xbf16, #tpu.memory_space<vmem>>, vector<8x32xbf16>,
    %c16 = arith.constant 16 : index
    %c0_22 = arith.constant 0 : index
    %52 = vector.load %arg10[%c16, %c0_22] : memref<64x128xf32, #tpu.memory_space<vmem>>, vector<8x128xf32>
    %53 = arith.truncf %49 : vector<8x32xf32> to vector<8x32xbf16>
    %cst_23 = arith.constant dense<0.000000e+00> : vector<8x128xf32>
    %54 = tpu.matmul %53, %1, %cst_23 {dimension_numbers = #tpu.dot_dimension_numbers<[1], [0], [0], [1], [0, 0, 1, 1], [], []>} : vector<8x32xbf16>, vector<32x128xbf16>, vector<8x128xf32> -> vector<8x128xf32>
    %55 = arith.addf %52, %54 : vector<8x128xf32>
    %56 = arith.negf %55 : vector<8x128xf32>
    %57 = math.exp %56 : vector<8x128xf32>
    %cst_24 = arith.constant 1.000000e+00 : f32
    %58 = vector.broadcast %cst_24 : f32 to vector<8x128xf32>
    %59 = arith.addf %58, %57 : vector<8x128xf32>
    %60 = arith.divf %58, %59 : vector<8x128xf32>
    %61 = math.tanh %55 : vector<8x128xf32>
    %62 = vector.extract_strided_slice %60 {offsets = [0, 0], sizes = [8, 32], strides = [1, 1]} : vector<8x128xf32> to vector<8x32xf32>
    %63 = vector.extract_strided_slice %60 {offsets = [0, 32], sizes = [8, 32], strides = [1, 1]} : vector<8x128xf32> to vector<8x32xf32>
    %64 = vector.extract_strided_slice %61 {offsets = [0, 64], sizes = [8, 32], strides = [1, 1]} : vector<8x128xf32> to vector<8x32xf32>
    %65 = vector.extract_strided_slice %60 {offsets = [0, 96], sizes = [8, 32], strides = [1, 1]} : vector<8x128xf32> to vector<8x32xf32>
    %66 = arith.mulf %63, %47 : vector<8x32xf32>
    %67 = arith.mulf %62, %64 : vector<8x32xf32>
    %68 = arith.addf %66, %67 : vector<8x32xf32>
    %69 = math.tanh %68 : vector<8x32xf32>
    %70 = arith.mulf %65, %69 : vector<8x32xf32>
    %71 = arith.truncf %70 : vector<8x32xf32> to vector<8x32xbf16>
    %c16_25 = arith.constant 16 : index
    %c0_26 = arith.constant 0 : index
    %72 = vector.load %arg11[%c16_25, %c0_26] : memref<64x32xbf16, #tpu.memory_space<vmem>>, vector<8x32xbf16>
    tpu.vector_store %arg11[%c16_25, %c0_26], %71 {strides = array<i32>} : memref<64x32xbf16, #tpu.memory_space<vmem>>, vector<8x32xbf16>,
    %c24 = arith.constant 24 : index
    %c0_27 = arith.constant 0 : index
    %73 = vector.load %arg10[%c24, %c0_27] : memref<64x128xf32, #tpu.memory_space<vmem>>, vector<8x128xf32>
    %74 = arith.truncf %70 : vector<8x32xf32> to vector<8x32xbf16>
    %cst_28 = arith.constant dense<0.000000e+00> : vector<8x128xf32>
    %75 = tpu.matmul %74, %1, %cst_28 {dimension_numbers = #tpu.dot_dimension_numbers<[1], [0], [0], [1], [0, 0, 1, 1], [], []>} : vector<8x32xbf16>, vector<32x128xbf16>, vector<8x128xf32> -> vector<8x128xf32>
    %76 = arith.addf %73, %75 : vector<8x128xf32>
    %77 = arith.negf %76 : vector<8x128xf32>
    %78 = math.exp %77 : vector<8x128xf32>
    %cst_29 = arith.constant 1.000000e+00 : f32
    %79 = vector.broadcast %cst_29 : f32 to vector<8x128xf32>
    %80 = arith.addf %79, %78 : vector<8x128xf32>
    %81 = arith.divf %79, %80 : vector<8x128xf32>
    %82 = math.tanh %76 : vector<8x128xf32>
    %83 = vector.extract_strided_slice %81 {offsets = [0, 0], sizes = [8, 32], strides = [1, 1]} : vector<8x128xf32> to vector<8x32xf32>
    %84 = vector.extract_strided_slice %81 {offsets = [0, 32], sizes = [8, 32], strides = [1, 1]} : vector<8x128xf32> to vector<8x32xf32>
    %85 = vector.extract_strided_slice %82 {offsets = [0, 64], sizes = [8, 32], strides = [1, 1]} : vector<8x128xf32> to vector<8x32xf32>
    %86 = vector.extract_strided_slice %81 {offsets = [0, 96], sizes = [8, 32], strides = [1, 1]} : vector<8x128xf32> to vector<8x32xf32>
    %87 = arith.mulf %84, %68 : vector<8x32xf32>
    %88 = arith.mulf %83, %85 : vector<8x32xf32>
    %89 = arith.addf %87, %88 : vector<8x32xf32>
    %90 = math.tanh %89 : vector<8x32xf32>
    %91 = arith.mulf %86, %90 : vector<8x32xf32>
    %92 = arith.truncf %91 : vector<8x32xf32> to vector<8x32xbf16>
    %c24_30 = arith.constant 24 : index
    %c0_31 = arith.constant 0 : index
    %93 = vector.load %arg11[%c24_30, %c0_31] : memref<64x32xbf16, #tpu.memory_space<vmem>>, vector<8x32xbf16>
    tpu.vector_store %arg11[%c24_30, %c0_31], %92 {strides = array<i32>} : memref<64x32xbf16, #tpu.memory_space<vmem>>, vector<8x32xbf16>,
    %c32 = arith.constant 32 : index
    %c0_32 = arith.constant 0 : index
    %94 = vector.load %arg10[%c32, %c0_32] : memref<64x128xf32, #tpu.memory_space<vmem>>, vector<8x128xf32>
    %95 = arith.truncf %91 : vector<8x32xf32> to vector<8x32xbf16>
    %cst_33 = arith.constant dense<0.000000e+00> : vector<8x128xf32>
    %96 = tpu.matmul %95, %1, %cst_33 {dimension_numbers = #tpu.dot_dimension_numbers<[1], [0], [0], [1], [0, 0, 1, 1], [], []>} : vector<8x32xbf16>, vector<32x128xbf16>, vector<8x128xf32> -> vector<8x128xf32>
    %97 = arith.addf %94, %96 : vector<8x128xf32>
    %98 = arith.negf %97 : vector<8x128xf32>
    %99 = math.exp %98 : vector<8x128xf32>
    %cst_34 = arith.constant 1.000000e+00 : f32
    %100 = vector.broadcast %cst_34 : f32 to vector<8x128xf32>
    %101 = arith.addf %100, %99 : vector<8x128xf32>
    %102 = arith.divf %100, %101 : vector<8x128xf32>
    %103 = math.tanh %97 : vector<8x128xf32>
    %104 = vector.extract_strided_slice %102 {offsets = [0, 0], sizes = [8, 32], strides = [1, 1]} : vector<8x128xf32> to vector<8x32xf32>
    %105 = vector.extract_strided_slice %102 {offsets = [0, 32], sizes = [8, 32], strides = [1, 1]} : vector<8x128xf32> to vector<8x32xf32>
    %106 = vector.extract_strided_slice %103 {offsets = [0, 64], sizes = [8, 32], strides = [1, 1]} : vector<8x128xf32> to vector<8x32xf32>
    %107 = vector.extract_strided_slice %102 {offsets = [0, 96], sizes = [8, 32], strides = [1, 1]} : vector<8x128xf32> to vector<8x32xf32>
    %108 = arith.mulf %105, %89 : vector<8x32xf32>
    %109 = arith.mulf %104, %106 : vector<8x32xf32>
    %110 = arith.addf %108, %109 : vector<8x32xf32>
    %111 = math.tanh %110 : vector<8x32xf32>
    %112 = arith.mulf %107, %111 : vector<8x32xf32>
    %113 = arith.truncf %112 : vector<8x32xf32> to vector<8x32xbf16>
    %c32_35 = arith.constant 32 : index
    %c0_36 = arith.constant 0 : index
    %114 = vector.load %arg11[%c32_35, %c0_36] : memref<64x32xbf16, #tpu.memory_space<vmem>>, vector<8x32xbf16>
    tpu.vector_store %arg11[%c32_35, %c0_36], %113 {strides = array<i32>} : memref<64x32xbf16, #tpu.memory_space<vmem>>, vector<8x32xbf16>,
    %c40 = arith.constant 40 : index
    %c0_37 = arith.constant 0 : index
    %115 = vector.load %arg10[%c40, %c0_37] : memref<64x128xf32, #tpu.memory_space<vmem>>, vector<8x128xf32>
    %116 = arith.truncf %112 : vector<8x32xf32> to vector<8x32xbf16>
    %cst_38 = arith.constant dense<0.000000e+00> : vector<8x128xf32>
    %117 = tpu.matmul %116, %1, %cst_38 {dimension_numbers = #tpu.dot_dimension_numbers<[1], [0], [0], [1], [0, 0, 1, 1], [], []>} : vector<8x32xbf16>, vector<32x128xbf16>, vector<8x128xf32> -> vector<8x128xf32>
    %118 = arith.addf %115, %117 : vector<8x128xf32>
    %119 = arith.negf %118 : vector<8x128xf32>
    %120 = math.exp %119 : vector<8x128xf32>
    %cst_39 = arith.constant 1.000000e+00 : f32
    %121 = vector.broadcast %cst_39 : f32 to vector<8x128xf32>
    %122 = arith.addf %121, %120 : vector<8x128xf32>
    %123 = arith.divf %121, %122 : vector<8x128xf32>
    %124 = math.tanh %118 : vector<8x128xf32>
    %125 = vector.extract_strided_slice %123 {offsets = [0, 0], sizes = [8, 32], strides = [1, 1]} : vector<8x128xf32> to vector<8x32xf32>
    %126 = vector.extract_strided_slice %123 {offsets = [0, 32], sizes = [8, 32], strides = [1, 1]} : vector<8x128xf32> to vector<8x32xf32>
    %127 = vector.extract_strided_slice %124 {offsets = [0, 64], sizes = [8, 32], strides = [1, 1]} : vector<8x128xf32> to vector<8x32xf32>
    %128 = vector.extract_strided_slice %123 {offsets = [0, 96], sizes = [8, 32], strides = [1, 1]} : vector<8x128xf32> to vector<8x32xf32>
    %129 = arith.mulf %126, %110 : vector<8x32xf32>
    %130 = arith.mulf %125, %127 : vector<8x32xf32>
    %131 = arith.addf %129, %130 : vector<8x32xf32>
    %132 = math.tanh %131 : vector<8x32xf32>
    %133 = arith.mulf %128, %132 : vector<8x32xf32>
    %134 = arith.truncf %133 : vector<8x32xf32> to vector<8x32xbf16>
    %c40_40 = arith.constant 40 : index
    %c0_41 = arith.constant 0 : index
    %135 = vector.load %arg11[%c40_40, %c0_41] : memref<64x32xbf16, #tpu.memory_space<vmem>>, vector<8x32xbf16>
    tpu.vector_store %arg11[%c40_40, %c0_41], %134 {strides = array<i32>} : memref<64x32xbf16, #tpu.memory_space<vmem>>, vector<8x32xbf16>,
    %c48 = arith.constant 48 : index
    %c0_42 = arith.constant 0 : index
    %136 = vector.load %arg10[%c48, %c0_42] : memref<64x128xf32, #tpu.memory_space<vmem>>, vector<8x128xf32>
    %137 = arith.truncf %133 : vector<8x32xf32> to vector<8x32xbf16>
    %cst_43 = arith.constant dense<0.000000e+00> : vector<8x128xf32>
    %138 = tpu.matmul %137, %1, %cst_43 {dimension_numbers = #tpu.dot_dimension_numbers<[1], [0], [0], [1], [0, 0, 1, 1], [], []>} : vector<8x32xbf16>, vector<32x128xbf16>, vector<8x128xf32> -> vector<8x128xf32>
    %139 = arith.addf %136, %138 : vector<8x128xf32>
    %140 = arith.negf %139 : vector<8x128xf32>
    %141 = math.exp %140 : vector<8x128xf32>
    %cst_44 = arith.constant 1.000000e+00 : f32
    %142 = vector.broadcast %cst_44 : f32 to vector<8x128xf32>
    %143 = arith.addf %142, %141 : vector<8x128xf32>
    %144 = arith.divf %142, %143 : vector<8x128xf32>
    %145 = math.tanh %139 : vector<8x128xf32>
    %146 = vector.extract_strided_slice %144 {offsets = [0, 0], sizes = [8, 32], strides = [1, 1]} : vector<8x128xf32> to vector<8x32xf32>
    %147 = vector.extract_strided_slice %144 {offsets = [0, 32], sizes = [8, 32], strides = [1, 1]} : vector<8x128xf32> to vector<8x32xf32>
    %148 = vector.extract_strided_slice %145 {offsets = [0, 64], sizes = [8, 32], strides = [1, 1]} : vector<8x128xf32> to vector<8x32xf32>
    %149 = vector.extract_strided_slice %144 {offsets = [0, 96], sizes = [8, 32], strides = [1, 1]} : vector<8x128xf32> to vector<8x32xf32>
    %150 = arith.mulf %147, %131 : vector<8x32xf32>
    %151 = arith.mulf %146, %148 : vector<8x32xf32>
    %152 = arith.addf %150, %151 : vector<8x32xf32>
    %153 = math.tanh %152 : vector<8x32xf32>
    %154 = arith.mulf %149, %153 : vector<8x32xf32>
    %155 = arith.truncf %154 : vector<8x32xf32> to vector<8x32xbf16>
    %c48_45 = arith.constant 48 : index
    %c0_46 = arith.constant 0 : index
    %156 = vector.load %arg11[%c48_45, %c0_46] : memref<64x32xbf16, #tpu.memory_space<vmem>>, vector<8x32xbf16>
    tpu.vector_store %arg11[%c48_45, %c0_46], %155 {strides = array<i32>} : memref<64x32xbf16, #tpu.memory_space<vmem>>, vector<8x32xbf16>,
    %c56 = arith.constant 56 : index
    %c0_47 = arith.constant 0 : index
    %157 = vector.load %arg10[%c56, %c0_47] : memref<64x128xf32, #tpu.memory_space<vmem>>, vector<8x128xf32>
    %158 = arith.truncf %154 : vector<8x32xf32> to vector<8x32xbf16>
    %cst_48 = arith.constant dense<0.000000e+00> : vector<8x128xf32>
    %159 = tpu.matmul %158, %1, %cst_48 {dimension_numbers = #tpu.dot_dimension_numbers<[1], [0], [0], [1], [0, 0, 1, 1], [], []>} : vector<8x32xbf16>, vector<32x128xbf16>, vector<8x128xf32> -> vector<8x128xf32>
    %160 = arith.addf %157, %159 : vector<8x128xf32>
    %161 = arith.negf %160 : vector<8x128xf32>
    %162 = math.exp %161 : vector<8x128xf32>
    %cst_49 = arith.constant 1.000000e+00 : f32
    %163 = vector.broadcast %cst_49 : f32 to vector<8x128xf32>
    %164 = arith.addf %163, %162 : vector<8x128xf32>
    %165 = arith.divf %163, %164 : vector<8x128xf32>
    %166 = math.tanh %160 : vector<8x128xf32>
    %167 = vector.extract_strided_slice %165 {offsets = [0, 0], sizes = [8, 32], strides = [1, 1]} : vector<8x128xf32> to vector<8x32xf32>
    %168 = vector.extract_strided_slice %165 {offsets = [0, 32], sizes = [8, 32], strides = [1, 1]} : vector<8x128xf32> to vector<8x32xf32>
    %169 = vector.extract_strided_slice %166 {offsets = [0, 64], sizes = [8, 32], strides = [1, 1]} : vector<8x128xf32> to vector<8x32xf32>
    %170 = vector.extract_strided_slice %165 {offsets = [0, 96], sizes = [8, 32], strides = [1, 1]} : vector<8x128xf32> to vector<8x32xf32>
    %171 = arith.mulf %168, %152 : vector<8x32xf32>
    %172 = arith.mulf %167, %169 : vector<8x32xf32>
    %173 = arith.addf %171, %172 : vector<8x32xf32>
    %174 = math.tanh %173 : vector<8x32xf32>
    %175 = arith.mulf %170, %174 : vector<8x32xf32>
    %176 = arith.truncf %175 : vector<8x32xf32> to vector<8x32xbf16>
    %c56_50 = arith.constant 56 : index
    %c0_51 = arith.constant 0 : index
    %177 = vector.load %arg11[%c56_50, %c0_51] : memref<64x32xbf16, #tpu.memory_space<vmem>>, vector<8x32xbf16>
    tpu.vector_store %arg11[%c56_50, %c0_51], %176 {strides = array<i32>} : memref<64x32xbf16, #tpu.memory_space<vmem>>, vector<8x32xbf16>,
    %c0_52 = arith.constant 0 : index
    %c0_53 = arith.constant 0 : index
    %178 = vector.load %arg4[%c0_52, %c0_53] : memref<32x128xbf16, #tpu.memory_space<vmem>>, vector<32x128xbf16>
    %c0_54 = arith.constant 0 : index
    %c0_55 = arith.constant 0 : index
    %179 = vector.load %arg5[%c0_54, %c0_55] : memref<32x128xbf16, #tpu.memory_space<vmem>>, vector<32x128xbf16>
    %c0_56 = arith.constant 0 : index
    %c0_57 = arith.constant 0 : index
    %180 = vector.load %arg6[%c0_56, %c0_57] : memref<1x128xf32, #tpu.memory_space<vmem>>, vector<1x128xf32>
    %c0_58 = arith.constant 0 : index
    %c0_59 = arith.constant 0 : index
    %181 = vector.load %arg11[%c0_58, %c0_59] : memref<64x32xbf16, #tpu.memory_space<vmem>>, vector<64x32xbf16>
    %cst_60 = arith.constant dense<0.000000e+00> : vector<64x128xf32>
    %182 = tpu.matmul %181, %178, %cst_60 {dimension_numbers = #tpu.dot_dimension_numbers<[1], [0], [0], [1], [0, 0, 1, 1], [], []>} : vector<64x32xbf16>, vector<32x128xbf16>, vector<64x128xf32> -> vector<64x128xf32>
    %183 = vector.broadcast %180 : vector<1x128xf32> to vector<64x128xf32>
    %184 = arith.addf %182, %183 : vector<64x128xf32>
    %c0_61 = arith.constant 0 : index
    %c0_62 = arith.constant 0 : index
    %185 = vector.load %arg10[%c0_61, %c0_62] : memref<64x128xf32, #tpu.memory_space<vmem>>, vector<64x128xf32>
    tpu.vector_store %arg10[%c0_61, %c0_62], %184 {strides = array<i32>} : memref<64x128xf32, #tpu.memory_space<vmem>>, vector<64x128xf32>,
    %cst_63 = arith.constant 0.000000e+00 : f32
    %186 = vector.broadcast %cst_63 : f32 to vector<8x32xf32>
    %cst_64 = arith.constant 0.000000e+00 : f32
    %187 = vector.broadcast %cst_64 : f32 to vector<8x32xf32>
    %c0_65 = arith.constant 0 : index
    %c0_66 = arith.constant 0 : index
    %188 = vector.load %arg10[%c0_65, %c0_66] : memref<64x128xf32, #tpu.memory_space<vmem>>, vector<8x128xf32>
    %189 = arith.truncf %186 : vector<8x32xf32> to vector<8x32xbf16>
    %cst_67 = arith.constant dense<0.000000e+00> : vector<8x128xf32>
    %190 = tpu.matmul %189, %179, %cst_67 {dimension_numbers = #tpu.dot_dimension_numbers<[1], [0], [0], [1], [0, 0, 1, 1], [], []>} : vector<8x32xbf16>, vector<32x128xbf16>, vector<8x128xf32> -> vector<8x128xf32>
    %191 = arith.addf %188, %190 : vector<8x128xf32>
    %192 = arith.negf %191 : vector<8x128xf32>
    %193 = math.exp %192 : vector<8x128xf32>
    %cst_68 = arith.constant 1.000000e+00 : f32
    %194 = vector.broadcast %cst_68 : f32 to vector<8x128xf32>
    %195 = arith.addf %194, %193 : vector<8x128xf32>
    %196 = arith.divf %194, %195 : vector<8x128xf32>
    %197 = math.tanh %191 : vector<8x128xf32>
    %198 = vector.extract_strided_slice %196 {offsets = [0, 0], sizes = [8, 32], strides = [1, 1]} : vector<8x128xf32> to vector<8x32xf32>
    %199 = vector.extract_strided_slice %196 {offsets = [0, 32], sizes = [8, 32], strides = [1, 1]} : vector<8x128xf32> to vector<8x32xf32>
    %200 = vector.extract_strided_slice %197 {offsets = [0, 64], sizes = [8, 32], strides = [1, 1]} : vector<8x128xf32> to vector<8x32xf32>
    %201 = vector.extract_strided_slice %196 {offsets = [0, 96], sizes = [8, 32], strides = [1, 1]} : vector<8x128xf32> to vector<8x32xf32>
    %202 = arith.mulf %199, %187 : vector<8x32xf32>
    %203 = arith.mulf %198, %200 : vector<8x32xf32>
    %204 = arith.addf %202, %203 : vector<8x32xf32>
    %205 = math.tanh %204 : vector<8x32xf32>
    %206 = arith.mulf %201, %205 : vector<8x32xf32>
    %c8_69 = arith.constant 8 : index
    %c0_70 = arith.constant 0 : index
    %207 = vector.load %arg10[%c8_69, %c0_70] : memref<64x128xf32, #tpu.memory_space<vmem>>, vector<8x128xf32>
    %208 = arith.truncf %206 : vector<8x32xf32> to vector<8x32xbf16>
    %cst_71 = arith.constant dense<0.000000e+00> : vector<8x128xf32>
    %209 = tpu.matmul %208, %179, %cst_71 {dimension_numbers = #tpu.dot_dimension_numbers<[1], [0], [0], [1], [0, 0, 1, 1], [], []>} : vector<8x32xbf16>, vector<32x128xbf16>, vector<8x128xf32> -> vector<8x128xf32>
    %210 = arith.addf %207, %209 : vector<8x128xf32>
    %211 = arith.negf %210 : vector<8x128xf32>
    %212 = math.exp %211 : vector<8x128xf32>
    %cst_72 = arith.constant 1.000000e+00 : f32
    %213 = vector.broadcast %cst_72 : f32 to vector<8x128xf32>
    %214 = arith.addf %213, %212 : vector<8x128xf32>
    %215 = arith.divf %213, %214 : vector<8x128xf32>
    %216 = math.tanh %210 : vector<8x128xf32>
    %217 = vector.extract_strided_slice %215 {offsets = [0, 0], sizes = [8, 32], strides = [1, 1]} : vector<8x128xf32> to vector<8x32xf32>
    %218 = vector.extract_strided_slice %215 {offsets = [0, 32], sizes = [8, 32], strides = [1, 1]} : vector<8x128xf32> to vector<8x32xf32>
    %219 = vector.extract_strided_slice %216 {offsets = [0, 64], sizes = [8, 32], strides = [1, 1]} : vector<8x128xf32> to vector<8x32xf32>
    %220 = vector.extract_strided_slice %215 {offsets = [0, 96], sizes = [8, 32], strides = [1, 1]} : vector<8x128xf32> to vector<8x32xf32>
    %221 = arith.mulf %218, %204 : vector<8x32xf32>
    %222 = arith.mulf %217, %219 : vector<8x32xf32>
    %223 = arith.addf %221, %222 : vector<8x32xf32>
    %224 = math.tanh %223 : vector<8x32xf32>
    %225 = arith.mulf %220, %224 : vector<8x32xf32>
    %c16_73 = arith.constant 16 : index
    %c0_74 = arith.constant 0 : index
    %226 = vector.load %arg10[%c16_73, %c0_74] : memref<64x128xf32, #tpu.memory_space<vmem>>, vector<8x128xf32>
    %227 = arith.truncf %225 : vector<8x32xf32> to vector<8x32xbf16>
    %cst_75 = arith.constant dense<0.000000e+00> : vector<8x128xf32>
    %228 = tpu.matmul %227, %179, %cst_75 {dimension_numbers = #tpu.dot_dimension_numbers<[1], [0], [0], [1], [0, 0, 1, 1], [], []>} : vector<8x32xbf16>, vector<32x128xbf16>, vector<8x128xf32> -> vector<8x128xf32>
    %229 = arith.addf %226, %228 : vector<8x128xf32>
    %230 = arith.negf %229 : vector<8x128xf32>
    %231 = math.exp %230 : vector<8x128xf32>
    %cst_76 = arith.constant 1.000000e+00 : f32
    %232 = vector.broadcast %cst_76 : f32 to vector<8x128xf32>
    %233 = arith.addf %232, %231 : vector<8x128xf32>
    %234 = arith.divf %232, %233 : vector<8x128xf32>
    %235 = math.tanh %229 : vector<8x128xf32>
    %236 = vector.extract_strided_slice %234 {offsets = [0, 0], sizes = [8, 32], strides = [1, 1]} : vector<8x128xf32> to vector<8x32xf32>
    %237 = vector.extract_strided_slice %234 {offsets = [0, 32], sizes = [8, 32], strides = [1, 1]} : vector<8x128xf32> to vector<8x32xf32>
    %238 = vector.extract_strided_slice %235 {offsets = [0, 64], sizes = [8, 32], strides = [1, 1]} : vector<8x128xf32> to vector<8x32xf32>
    %239 = vector.extract_strided_slice %234 {offsets = [0, 96], sizes = [8, 32], strides = [1, 1]} : vector<8x128xf32> to vector<8x32xf32>
    %240 = arith.mulf %237, %223 : vector<8x32xf32>
    %241 = arith.mulf %236, %238 : vector<8x32xf32>
    %242 = arith.addf %240, %241 : vector<8x32xf32>
    %243 = math.tanh %242 : vector<8x32xf32>
    %244 = arith.mulf %239, %243 : vector<8x32xf32>
    %c24_77 = arith.constant 24 : index
    %c0_78 = arith.constant 0 : index
    %245 = vector.load %arg10[%c24_77, %c0_78] : memref<64x128xf32, #tpu.memory_space<vmem>>, vector<8x128xf32>
    %246 = arith.truncf %244 : vector<8x32xf32> to vector<8x32xbf16>
    %cst_79 = arith.constant dense<0.000000e+00> : vector<8x128xf32>
    %247 = tpu.matmul %246, %179, %cst_79 {dimension_numbers = #tpu.dot_dimension_numbers<[1], [0], [0], [1], [0, 0, 1, 1], [], []>} : vector<8x32xbf16>, vector<32x128xbf16>, vector<8x128xf32> -> vector<8x128xf32>
    %248 = arith.addf %245, %247 : vector<8x128xf32>
    %249 = arith.negf %248 : vector<8x128xf32>
    %250 = math.exp %249 : vector<8x128xf32>
    %cst_80 = arith.constant 1.000000e+00 : f32
    %251 = vector.broadcast %cst_80 : f32 to vector<8x128xf32>
    %252 = arith.addf %251, %250 : vector<8x128xf32>
    %253 = arith.divf %251, %252 : vector<8x128xf32>
    %254 = math.tanh %248 : vector<8x128xf32>
    %255 = vector.extract_strided_slice %253 {offsets = [0, 0], sizes = [8, 32], strides = [1, 1]} : vector<8x128xf32> to vector<8x32xf32>
    %256 = vector.extract_strided_slice %253 {offsets = [0, 32], sizes = [8, 32], strides = [1, 1]} : vector<8x128xf32> to vector<8x32xf32>
    %257 = vector.extract_strided_slice %254 {offsets = [0, 64], sizes = [8, 32], strides = [1, 1]} : vector<8x128xf32> to vector<8x32xf32>
    %258 = vector.extract_strided_slice %253 {offsets = [0, 96], sizes = [8, 32], strides = [1, 1]} : vector<8x128xf32> to vector<8x32xf32>
    %259 = arith.mulf %256, %242 : vector<8x32xf32>
    %260 = arith.mulf %255, %257 : vector<8x32xf32>
    %261 = arith.addf %259, %260 : vector<8x32xf32>
    %262 = math.tanh %261 : vector<8x32xf32>
    %263 = arith.mulf %258, %262 : vector<8x32xf32>
    %c32_81 = arith.constant 32 : index
    %c0_82 = arith.constant 0 : index
    %264 = vector.load %arg10[%c32_81, %c0_82] : memref<64x128xf32, #tpu.memory_space<vmem>>, vector<8x128xf32>
    %265 = arith.truncf %263 : vector<8x32xf32> to vector<8x32xbf16>
    %cst_83 = arith.constant dense<0.000000e+00> : vector<8x128xf32>
    %266 = tpu.matmul %265, %179, %cst_83 {dimension_numbers = #tpu.dot_dimension_numbers<[1], [0], [0], [1], [0, 0, 1, 1], [], []>} : vector<8x32xbf16>, vector<32x128xbf16>, vector<8x128xf32> -> vector<8x128xf32>
    %267 = arith.addf %264, %266 : vector<8x128xf32>
    %268 = arith.negf %267 : vector<8x128xf32>
    %269 = math.exp %268 : vector<8x128xf32>
    %cst_84 = arith.constant 1.000000e+00 : f32
    %270 = vector.broadcast %cst_84 : f32 to vector<8x128xf32>
    %271 = arith.addf %270, %269 : vector<8x128xf32>
    %272 = arith.divf %270, %271 : vector<8x128xf32>
    %273 = math.tanh %267 : vector<8x128xf32>
    %274 = vector.extract_strided_slice %272 {offsets = [0, 0], sizes = [8, 32], strides = [1, 1]} : vector<8x128xf32> to vector<8x32xf32>
    %275 = vector.extract_strided_slice %272 {offsets = [0, 32], sizes = [8, 32], strides = [1, 1]} : vector<8x128xf32> to vector<8x32xf32>
    %276 = vector.extract_strided_slice %273 {offsets = [0, 64], sizes = [8, 32], strides = [1, 1]} : vector<8x128xf32> to vector<8x32xf32>
    %277 = vector.extract_strided_slice %272 {offsets = [0, 96], sizes = [8, 32], strides = [1, 1]} : vector<8x128xf32> to vector<8x32xf32>
    %278 = arith.mulf %275, %261 : vector<8x32xf32>
    %279 = arith.mulf %274, %276 : vector<8x32xf32>
    %280 = arith.addf %278, %279 : vector<8x32xf32>
    %281 = math.tanh %280 : vector<8x32xf32>
    %282 = arith.mulf %277, %281 : vector<8x32xf32>
    %c40_85 = arith.constant 40 : index
    %c0_86 = arith.constant 0 : index
    %283 = vector.load %arg10[%c40_85, %c0_86] : memref<64x128xf32, #tpu.memory_space<vmem>>, vector<8x128xf32>
    %284 = arith.truncf %282 : vector<8x32xf32> to vector<8x32xbf16>
    %cst_87 = arith.constant dense<0.000000e+00> : vector<8x128xf32>
    %285 = tpu.matmul %284, %179, %cst_87 {dimension_numbers = #tpu.dot_dimension_numbers<[1], [0], [0], [1], [0, 0, 1, 1], [], []>} : vector<8x32xbf16>, vector<32x128xbf16>, vector<8x128xf32> -> vector<8x128xf32>
    %286 = arith.addf %283, %285 : vector<8x128xf32>
    %287 = arith.negf %286 : vector<8x128xf32>
    %288 = math.exp %287 : vector<8x128xf32>
    %cst_88 = arith.constant 1.000000e+00 : f32
    %289 = vector.broadcast %cst_88 : f32 to vector<8x128xf32>
    %290 = arith.addf %289, %288 : vector<8x128xf32>
    %291 = arith.divf %289, %290 : vector<8x128xf32>
    %292 = math.tanh %286 : vector<8x128xf32>
    %293 = vector.extract_strided_slice %291 {offsets = [0, 0], sizes = [8, 32], strides = [1, 1]} : vector<8x128xf32> to vector<8x32xf32>
    %294 = vector.extract_strided_slice %291 {offsets = [0, 32], sizes = [8, 32], strides = [1, 1]} : vector<8x128xf32> to vector<8x32xf32>
    %295 = vector.extract_strided_slice %292 {offsets = [0, 64], sizes = [8, 32], strides = [1, 1]} : vector<8x128xf32> to vector<8x32xf32>
    %296 = vector.extract_strided_slice %291 {offsets = [0, 96], sizes = [8, 32], strides = [1, 1]} : vector<8x128xf32> to vector<8x32xf32>
    %297 = arith.mulf %294, %280 : vector<8x32xf32>
    %298 = arith.mulf %293, %295 : vector<8x32xf32>
    %299 = arith.addf %297, %298 : vector<8x32xf32>
    %300 = math.tanh %299 : vector<8x32xf32>
    %301 = arith.mulf %296, %300 : vector<8x32xf32>
    %c48_89 = arith.constant 48 : index
    %c0_90 = arith.constant 0 : index
    %302 = vector.load %arg10[%c48_89, %c0_90] : memref<64x128xf32, #tpu.memory_space<vmem>>, vector<8x128xf32>
    %303 = arith.truncf %301 : vector<8x32xf32> to vector<8x32xbf16>
    %cst_91 = arith.constant dense<0.000000e+00> : vector<8x128xf32>
    %304 = tpu.matmul %303, %179, %cst_91 {dimension_numbers = #tpu.dot_dimension_numbers<[1], [0], [0], [1], [0, 0, 1, 1], [], []>} : vector<8x32xbf16>, vector<32x128xbf16>, vector<8x128xf32> -> vector<8x128xf32>
    %305 = arith.addf %302, %304 : vector<8x128xf32>
    %306 = arith.negf %305 : vector<8x128xf32>
    %307 = math.exp %306 : vector<8x128xf32>
    %cst_92 = arith.constant 1.000000e+00 : f32
    %308 = vector.broadcast %cst_92 : f32 to vector<8x128xf32>
    %309 = arith.addf %308, %307 : vector<8x128xf32>
    %310 = arith.divf %308, %309 : vector<8x128xf32>
    %311 = math.tanh %305 : vector<8x128xf32>
    %312 = vector.extract_strided_slice %310 {offsets = [0, 0], sizes = [8, 32], strides = [1, 1]} : vector<8x128xf32> to vector<8x32xf32>
    %313 = vector.extract_strided_slice %310 {offsets = [0, 32], sizes = [8, 32], strides = [1, 1]} : vector<8x128xf32> to vector<8x32xf32>
    %314 = vector.extract_strided_slice %311 {offsets = [0, 64], sizes = [8, 32], strides = [1, 1]} : vector<8x128xf32> to vector<8x32xf32>
    %315 = vector.extract_strided_slice %310 {offsets = [0, 96], sizes = [8, 32], strides = [1, 1]} : vector<8x128xf32> to vector<8x32xf32>
    %316 = arith.mulf %313, %299 : vector<8x32xf32>
    %317 = arith.mulf %312, %314 : vector<8x32xf32>
    %318 = arith.addf %316, %317 : vector<8x32xf32>
    %319 = math.tanh %318 : vector<8x32xf32>
    %320 = arith.mulf %315, %319 : vector<8x32xf32>
    %c56_93 = arith.constant 56 : index
    %c0_94 = arith.constant 0 : index
    %321 = vector.load %arg10[%c56_93, %c0_94] : memref<64x128xf32, #tpu.memory_space<vmem>>, vector<8x128xf32>
    %322 = arith.truncf %320 : vector<8x32xf32> to vector<8x32xbf16>
    %cst_95 = arith.constant dense<0.000000e+00> : vector<8x128xf32>
    %323 = tpu.matmul %322, %179, %cst_95 {dimension_numbers = #tpu.dot_dimension_numbers<[1], [0], [0], [1], [0, 0, 1, 1], [], []>} : vector<8x32xbf16>, vector<32x128xbf16>, vector<8x128xf32> -> vector<8x128xf32>
    %324 = arith.addf %321, %323 : vector<8x128xf32>
    %325 = arith.negf %324 : vector<8x128xf32>
    %326 = math.exp %325 : vector<8x128xf32>
    %cst_96 = arith.constant 1.000000e+00 : f32
    %327 = vector.broadcast %cst_96 : f32 to vector<8x128xf32>
    %328 = arith.addf %327, %326 : vector<8x128xf32>
    %329 = arith.divf %327, %328 : vector<8x128xf32>
    %330 = math.tanh %324 : vector<8x128xf32>
    %331 = vector.extract_strided_slice %329 {offsets = [0, 0], sizes = [8, 32], strides = [1, 1]} : vector<8x128xf32> to vector<8x32xf32>
    %332 = vector.extract_strided_slice %329 {offsets = [0, 32], sizes = [8, 32], strides = [1, 1]} : vector<8x128xf32> to vector<8x32xf32>
    %333 = vector.extract_strided_slice %330 {offsets = [0, 64], sizes = [8, 32], strides = [1, 1]} : vector<8x128xf32> to vector<8x32xf32>
    %334 = vector.extract_strided_slice %329 {offsets = [0, 96], sizes = [8, 32], strides = [1, 1]} : vector<8x128xf32> to vector<8x32xf32>
    %335 = arith.mulf %332, %318 : vector<8x32xf32>
    %336 = arith.mulf %331, %333 : vector<8x32xf32>
    %337 = arith.addf %335, %336 : vector<8x32xf32>
    %338 = math.tanh %337 : vector<8x32xf32>
    %339 = arith.mulf %334, %338 : vector<8x32xf32>
    %340 = arith.truncf %339 : vector<8x32xf32> to vector<8x32xbf16>
    %c0_97 = arith.constant 0 : index
    %c0_98 = arith.constant 0 : index
    %341 = vector.load %arg7[%c0_97, %c0_98] : memref<32x16xbf16, #tpu.memory_space<vmem>>, vector<32x16xbf16>
    %cst_99 = arith.constant dense<0.000000e+00> : vector<8x16xf32>
    %342 = tpu.matmul %340, %341, %cst_99 {dimension_numbers = #tpu.dot_dimension_numbers<[1], [0], [0], [1], [0, 0, 1, 1], [], []>} : vector<8x32xbf16>, vector<32x16xbf16>, vector<8x16xf32> -> vector<8x16xf32>
    %c0_100 = arith.constant 0 : index
    %c0_101 = arith.constant 0 : index
    %343 = vector.load %arg8[%c0_100, %c0_101] : memref<1x16xf32, #tpu.memory_space<vmem>>, vector<1x16xf32>
    %344 = vector.broadcast %343 : vector<1x16xf32> to vector<8x16xf32>
    %345 = arith.addf %342, %344 : vector<8x16xf32>
    %c0_102 = arith.constant 0 : index
    %c0_103 = arith.constant 0 : index
    %346 = vector.load %arg9[%c0_102, %c0_103] : memref<8x16xf32, #tpu.memory_space<vmem>>, vector<8x16xf32>
    tpu.vector_store %arg9[%c0_102, %c0_103], %345 {strides = array<i32>} : memref<8x16xf32, #tpu.memory_space<vmem>>, vector<8x16xf32>,
    return
  }
}

</mosaic_0001>

<bundles_post_ra>
// kernel: fflstm_encoder1_forward.1
= control target key start
LH: loop header
LB: loop body
LE: loop exit
PB: predicated region body
PF: predicated region fallthrough
CT: control target
= control target key end

     0   :  { %v1992_v0 = vmov 0.0   ;;  %vm1993_vm0 = vmmov 0   ;;  %vm80_vm1 = vcmask 130048   ;;  %v1994_v6 = vmov 0   ;;  %s1995_s19 = smov 64   ;;  %s2382_s1 = inlined_call_operand.vmem [shape: bf16[16,128], index: 1, kind: input, shape index: {}]   ;;  %s2383_s2 = inlined_call_operand.vmem [shape: bf16[32,128], index: 2, kind: input, shape index: {}]   ;;  %s2384_s0 = inlined_call_operand.vmem [shape: bf16[64,16], index: 0, kind: input, shape index: {}]   ;;  %s2385_s3 = inlined_call_operand.vmem [shape: f32[1,128], index: 3, kind: input, shape index: {}]   ;;  %s2386_s4 = inlined_call_operand.vmem [shape: bf16[32,128], index: 4, kind: input, shape index: {}]   ;;  %s2387_s5 = inlined_call_operand.vmem [shape: bf16[32,128], index: 5, kind: input, shape index: {}]   ;;  %s2388_s6 = inlined_call_operand.vmem [shape: f32[1,128], index: 6, kind: input, shape index: {}]   ;;  %s2389_s7 = inlined_call_operand.vmem [shape: bf16[32,16], index: 7, kind: input, shape index: {}]   ;;  %s2390_s8 = inlined_call_operand.vmem [shape: f32[1,16], index: 8, kind: input, shape index: {}]   ;;  %s2391_s9 = inlined_call_operand.vmem [shape: f32[8,16], index: 9, kind: output, shape index: {}]  }
   0x1   :  { %1698 = vmatprep.subr.bf16.mxu1 %v1992_v0  ;;  %v1851_v1 = vld [vmem:[%s2382_s1] sm:$0xff]   ;;  %1702 = vmatprep.mubr.msk.bf16.mxu1 %vm1993_vm0, %v1992_v0  ;;  %v1854_v4 = vld [vmem:[%s2384_s0 + $0x8] sm:$0xff]   ;;  %vm253_vm2 = vcmask 257024   ;;  %vm179_vm3 = vcmask 261120   ;;  %v1856_v49 = vld [vmem:[%s2384_s0 + $0x10] sm:$0xff]   ;;  %vm330_vm4 = vcmask 261124  }
   0x2   :  { %v2056_v2 = vld [vmem:[%s2383_s2] sm:$0xff]   ;;  %1688 = vmatprep.subr.bf16.mxu0 %v1851_v1  ;;  %v2070_v5 = vld [vmem:[%s2383_s2 + $0x8] sm:$0xff]   ;;  %v1857_v50 = vld [vmem:[%s2384_s0 + $0x18] sm:$0xff]  }
   0x3   :  { %v1853_v3 = vld [vmem:[%s2384_s0] sm:$0xff]   ;;  %1699 = vmatpush3.bf16.msra.mxu1 %v2056_v2  ;;  %1689 = vmatpush3.bf16.msra.mxu0 %v1851_v1 }
   0x4   :  { %1690 = vmatprep.mubr.msk.bf16.mxu0 %vm80_vm1, %v1853_v3  ;;  %1700 = vmatprep.subr.bf16.mxu1 %v1992_v0  ;;  %v2090_v7 = vld [vmem:[%s2385_s3] ss:$0 sm:$0xff]  ;;  %s1996_s3 = smov 32  }
   0x5   :  { %1714 = vmatprep.subr.bf16.mxu0 %v1992_v0 }
   0x6   :  { %1691 = vmatmul.mubr.msk.bf16.vlgmr.msra.gmra.mrb[0].mxu0 %vm80_vm1, %v1854_v4 }
   0x7   :  { %1701 = vmatpush3.bf16.msra.mxu1 %v2070_v5  ;;  %1715 = vmatpush3.bf16.msra.mxu0 %v2056_v2 }
   0x8   :  { %1706 = vmatprep.subr.bf16.mxu1 %v1992_v0  ;;  %1716 = vmatprep.subr.bf16.mxu0 %v1992_v0 }
   0x9   :  { %1694 = vmatprep.mubr.msk.bf16.mxu0 %vm80_vm1, %v1856_v49 }
   0xa   :  { %1703 = vmatmul.mubr.bf16.vlgmr.msra.gmra.mrb[0].mxu1 %v1994_v6 }
   0xb   :  { %1707 = vmatpush3.bf16.msra.mxu1 %v2056_v2  ;;  %1710 = vmatprep.mubr.msk.bf16.mxu1 %vm1993_vm0, %v1992_v0 }
   0xc   :  { %1708 = vmatprep.subr.bf16.mxu1 %v1992_v0  ;;  %1717 = vmatpush3.bf16.msra.mxu0 %v2070_v5 }
   0xd   :  { %1730 = vmatprep.subr.bf16.mxu0 %v1992_v0 }
   0xe   :  { %1695 = vmatmul.mubr.msk.bf16.gmra.mrb[4].mxu0 %vm80_vm1, %v1857_v50 }
   0xf   :  { %1709 = vmatpush3.bf16.msra.mxu1 %v2070_v5  ;;  %1718 = vmatprep.mubr.msk.bf16.mxu0 %vm1993_vm0, %v1992_v0 }
  0x10   :  { %1722 = vmatprep.subr.bf16.mxu1 %v1992_v0 }
  0xd9   :  { %v2092_v8 = vpop.f32.mrb[0].mxu0 }
  0xda   :  { %v127_v9 = vpop.f32.mrb[1].mxu0  ;;  %v136_v60 = vadd.f32 %v2092_v8, %v2090_v7 }
  0xdb   :  { %v128_v10 = vadd.f32 %v2090_v7, %v127_v9  ;;  %v2095_v11 = vpop.f32.mrb[2].mxu0 }
  0xdc   :  { %v130_v12 = vpop.f32.mrb[3].mxu0 }
  0xdd   :  { %v217_v13 = vpop.f32.mrb[0].mxu1  ;;  %v131_v33 = vadd.f32 %v2090_v7, %v130_v12 }
  0xde   :  { %v223_v14 = vadd.f32 %v217_v13, %v128_v10  ;;  %v1704_v15 = vpop.f32.mrb[1].mxu1 }
  0xdf   :  { %v220_v16 = vpop.f32.mrb[2].mxu1 }
  0xe0   :  { %1864 = vtanh.f32 %v223_v14  ;;  %v1705_v17 = vpop.f32.mrb[3].mxu1  ;;  %v1583_v19 = vmul.f32 -1.442695, %v223_v14 }
  0xe1   :  { %v2127_v55 = vpop.f32.mrb[4].mxu0 }
  0xe2   :  { %1866 = vpow2.f32 %v1583_v19  ;;  %v2129_v56 = vpop.f32.mrb[5].mxu0 }
  0xe3   :  { %v2131_v57 = vpop.f32.mrb[6].mxu0 }
  0xe4   :  { %v2133_v58 = vpop.f32.mrb[7].mxu0 }
  0xea   :  { %v1865_v18 = vpop.eup %1864 }
  0xeb   :  { %233 = vrot.lane.b32.xlu0 %v1865_v18, %s1995_s19 }
  0xec   :  { %v1867_v20 = vpop.eup %1866 }
  0xed   :  { %v227_v21 = vadd.f32 1.0, %v1867_v20 }
  0xef   :  { %1868 = vrcp.f32 %v227_v21 }
  0xf9   :  { %v1869_v22 = vpop.eup %1868 }
  0xfa   :  { %v231_v25 = vmul.f32 0.0, %v1869_v22 }
 0x15d   :  { %v234_v23 = vpop.permute.xlu0 %233 }
 0x15e   :  { %v236_v24 = vmul.f32 %v1869_v22, %v234_v23  ;;  %v139_v23 = vadd.f32 %v2095_v11, %v2090_v7 }
 0x160   :  { %238 = vrot.lane.b32.xlu0 %v236_v24, %s1996_s3 }
 0x1d2   :  { %v239_v26 = vpop.permute.xlu0 %238 }
 0x1d3   :  { %v241_v27 = vadd.f32 %v239_v26, %v231_v25 }
 0x1d5   :  { %1870 = vtanh.f32 %v241_v27 }
 0x1df   :  { %v1871_v28 = vpop.eup %1870 }
 0x1e0   :  { %244 = vrot.lane.b32.xlu1 %v1871_v28, %s1995_s19 }
 0x252   :  { %v245_v29 = vpop.permute.xlu1 %244 }
 0x253   :  { %v247_v30 = vmul.f32 %v1869_v22, %v245_v29 }
 0x255   :  { %v248_v31 = vpack.c.bf16 %v247_v30, %v247_v30 }
 0x257   :  { %250 = vrot.lane.b32.xlu1 %v248_v31, %s1996_s3 }
 0x2c9   :  { %v251_v32 = vpop.permute.xlu1 %250 }
 0x2ca   :  { %254 = vst.msk [vmem:[#allocation3] sm:$0xf] %vm253_vm2, %v251_v32  ;;  %1711 = vmatmul.mubr.msk.bf16.vlgmr.msra.gmra.mrb[4].mxu1 %vm179_vm3, %v251_v32 }
 0x2cb   :  { %1723 = vmatpush3.bf16.msra.mxu1 %v2056_v2  ;;  %1726 = vmatprep.mubr.msk.bf16.mxu1 %vm1993_vm0, %v1992_v0 }
 0x2cc   :  { %1724 = vmatprep.subr.bf16.mxu1 %v1992_v0 }
 0x2cf   :  { %1725 = vmatpush3.bf16.msra.mxu1 %v2070_v5 }
 0x2d0   :  { %1738 = vmatprep.subr.bf16.mxu1 %v1992_v0 }
 0x39d   :  { %v293_v34 = vpop.f32.mrb[4].mxu1 }
 0x39e   :  { %v299_v35 = vadd.f32 %v293_v34, %v131_v33  ;;  %v1712_v36 = vpop.f32.mrb[5].mxu1 }
 0x39f   :  { %v296_v37 = vpop.f32.mrb[6].mxu1 }
 0x3a0   :  { %1872 = vtanh.f32 %v299_v35  ;;  %v1713_v38 = vpop.f32.mrb[7].mxu1  ;;  %v1585_v40 = vmul.f32 -1.442695, %v299_v35 }
 0x3a2   :  { %1874 = vpow2.f32 %v1585_v40 }
 0x3aa   :  { %v1873_v39 = vpop.eup %1872 }
 0x3ab   :  { %309 = vrot.lane.b32.xlu0 %v1873_v39, %s1995_s19 }
 0x3ac   :  { %v1875_v41 = vpop.eup %1874 }
 0x3ad   :  { %v303_v42 = vadd.f32 1.0, %v1875_v41 }
 0x3af   :  { %1876 = vrcp.f32 %v303_v42 }
 0x3b9   :  { %v1877_v43 = vpop.eup %1876 }
 0x3ba   :  { %v307_v46 = vmul.f32 %v1877_v43, %v241_v27 }
 0x41d   :  { %v310_v44 = vpop.permute.xlu0 %309 }
 0x41e   :  { %v312_v45 = vmul.f32 %v1877_v43, %v310_v44 }
 0x420   :  { %314 = vrot.lane.b32.xlu1 %v312_v45, %s1996_s3 }
 0x492   :  { %v315_v47 = vpop.permute.xlu1 %314 }
 0x493   :  { %v317_v48 = vadd.f32 %v315_v47, %v307_v46 }
 0x495   :  { %1878 = vtanh.f32 %v317_v48 }
 0x49f   :  { %v1879_v51 = vpop.eup %1878 }
 0x4a0   :  { %320 = vrot.lane.b32.xlu0 %v1879_v51, %s1995_s19 }
 0x512   :  { %v321_v52 = vpop.permute.xlu0 %320 }
 0x513   :  { %v323_v53 = vmul.f32 %v1877_v43, %v321_v52  ;;  %v144_v43 = vadd.f32 %v2090_v7, %v2129_v56 }
 0x515   :  { %v2123_v54 = vpack.c.bf16 %v323_v53, %v323_v53 }
 0x517   :  { %333 = vrot.lane.b32.xlu1 %v2123_v54, %s1996_s3 }
 0x589   :  { %v334_v59 = vpop.permute.xlu1 %333 }
 0x58a   :  { %1719 = vmatmul.mubr.msk.bf16.vlgmr.msra.gmra.mrb[8].mxu0 %vm179_vm3, %v334_v59 }
 0x58b   :  { %1731 = vmatpush3.bf16.msra.mxu0 %v2056_v2  ;;  %1734 = vmatprep.mubr.msk.bf16.mxu0 %vm1993_vm0, %v1992_v0 }
 0x58c   :  { %1732 = vmatprep.subr.bf16.mxu0 %v1992_v0 }
 0x58f   :  { %1733 = vmatpush3.bf16.msra.mxu0 %v2070_v5 }
 0x590   :  { %1746 = vmatprep.subr.bf16.mxu0 %v1992_v0 }
 0x65d   :  { %v372_v61 = vpop.f32.mrb[8].mxu0 }
 0x65e   :  { %v378_v62 = vadd.f32 %v372_v61, %v136_v60  ;;  %v1720_v63 = vpop.f32.mrb[9].mxu0 }
 0x65f   :  { %v375_v1 = vpop.f32.mrb[10].mxu0 }
 0x660   :  { %1880 = vtanh.f32 %v378_v62  ;;  %v1721_v3 = vpop.f32.mrb[11].mxu0  ;;  %v1587_v9 = vmul.f32 -1.442695, %v378_v62 }
 0x662   :  { %1882 = vpow2.f32 %v1587_v9 }
 0x66a   :  { %v1881_v4 = vpop.eup %1880 }
 0x66b   :  { %388 = vrot.lane.b32.xlu0 %v1881_v4, %s1995_s19 }
 0x66c   :  { %v1883_v10 = vpop.eup %1882 }
 0x66d   :  { %v382_v12 = vadd.f32 1.0, %v1883_v10  ;;  %v147_v10 = vadd.f32 %v2090_v7, %v2133_v58 }
 0x66f   :  { %1884 = vrcp.f32 %v382_v12 }
 0x679   :  { %v1885_v13 = vpop.eup %1884 }
 0x67a   :  { %v386_v8 = vmul.f32 %v1885_v13, %v317_v48 }
 0x6dd   :  { %v389_v14 = vpop.permute.xlu0 %388 }
 0x6de   :  { %v391_v15 = vmul.f32 %v1885_v13, %v389_v14 }
 0x6e0   :  { %393 = vrot.lane.b32.xlu1 %v391_v15, %s1996_s3 }
 0x752   :  { %v394_v16 = vpop.permute.xlu1 %393 }
 0x753   :  { %v396_v17 = vadd.f32 %v394_v16, %v386_v8 }
 0x755   :  { %1886 = vtanh.f32 %v396_v17 }
 0x75f   :  { %v1887_v18 = vpop.eup %1886 }
 0x760   :  { %399 = vrot.lane.b32.xlu0 %v1887_v18, %s1995_s19 }
 0x7d2   :  { %v400_v19 = vpop.permute.xlu0 %399 }
 0x7d3   :  { %v402_v20 = vmul.f32 %v1885_v13, %v400_v19 }
 0x7d5   :  { %v403_v21 = vpack.c.bf16 %v402_v20, %v402_v20 }
 0x7d7   :  { %405 = vrot.lane.b32.xlu1 %v403_v21, %s1996_s3 }
 0x849   :  { %v406_v22 = vpop.permute.xlu1 %405 }
 0x84a   :  { %408 = vst.msk [vmem:[#allocation3 + $0x8] sm:$0xf] %vm253_vm2, %v406_v22  ;;  %1727 = vmatmul.mubr.msk.bf16.vlgmr.msra.gmra.mrb[8].mxu1 %vm179_vm3, %v406_v22 }
 0x84b   :  { %1739 = vmatpush3.bf16.msra.mxu1 %v2056_v2  ;;  %1742 = vmatprep.mubr.msk.bf16.mxu1 %vm1993_vm0, %v1992_v0 }
 0x84c   :  { %1740 = vmatprep.subr.bf16.mxu1 %v1992_v0 }
 0x84f   :  { %1741 = vmatpush3.bf16.msra.mxu1 %v2070_v5 }
 0x850   :  { %1754 = vmatprep.subr.bf16.mxu1 %v1992_v0 }
 0x91d   :  { %v447_v24 = vpop.f32.mrb[8].mxu1 }
 0x91e   :  { %v453_v25 = vadd.f32 %v447_v24, %v139_v23  ;;  %v1728_v26 = vpop.f32.mrb[9].mxu1 }
 0x91f   :  { %v450_v27 = vpop.f32.mrb[10].mxu1 }
 0x920   :  { %1888 = vtanh.f32 %v453_v25  ;;  %v1729_v28 = vpop.f32.mrb[11].mxu1  ;;  %v1589_v30 = vmul.f32 -1.442695, %v453_v25 }
 0x921   :  { %v152_v28 = vadd.f32 %v2127_v55, %v2090_v7  ;;  %v326_v55 = vrot.slane %v2123_v54, 4  ;;  %v1859_v54 = vld [vmem:[%s2386_s4 + $0x8] sm:$0xff]  }
 0x922   :  { %1890 = vpow2.f32 %v1589_v30 }
 0x92a   :  { %v1889_v29 = vpop.eup %1888 }
 0x92b   :  { %463 = vrot.lane.b32.xlu0 %v1889_v29, %s1995_s19 }
 0x92c   :  { %v1891_v31 = vpop.eup %1890 }
 0x92d   :  { %v457_v32 = vadd.f32 1.0, %v1891_v31 }
 0x92f   :  { %1892 = vrcp.f32 %v457_v32 }
 0x939   :  { %v1893_v33 = vpop.eup %1892 }
 0x93a   :  { %v461_v11 = vmul.f32 %v1893_v33, %v396_v17 }
 0x99d   :  { %v464_v34 = vpop.permute.xlu0 %463 }
 0x99e   :  { %v466_v35 = vmul.f32 %v1893_v33, %v464_v34 }
 0x9a0   :  { %468 = vrot.lane.b32.xlu1 %v466_v35, %s1996_s3 }
 0xa12   :  { %v469_v36 = vpop.permute.xlu1 %468 }
 0xa13   :  { %v471_v37 = vadd.f32 %v469_v36, %v461_v11 }
 0xa15   :  { %1894 = vtanh.f32 %v471_v37 }
 0xa1f   :  { %v1895_v38 = vpop.eup %1894 }
 0xa20   :  { %474 = vrot.lane.b32.xlu0 %v1895_v38, %s1995_s19 }
 0xa92   :  { %v475_v39 = vpop.permute.xlu0 %474 }
 0xa93   :  { %v477_v40 = vmul.f32 %v1893_v33, %v475_v39 }
 0xa95   :  { %v2161_v41 = vpack.c.bf16 %v477_v40, %v477_v40 }
 0xa97   :  { %486 = vrot.lane.b32.xlu1 %v2161_v41, %s1996_s3 }
 0xb09   :  { %v487_v42 = vpop.permute.xlu1 %486 }
 0xb0a   :  { %1735 = vmatmul.mubr.msk.bf16.vlgmr.msra.gmra.mrb[12].mxu0 %vm179_vm3, %v487_v42 }
 0xb0b   :  { %1747 = vmatpush3.bf16.msra.mxu0 %v2056_v2  ;;  %1750 = vmatprep.mubr.msk.bf16.mxu0 %vm1993_vm0, %v1992_v0 }
 0xb0c   :  { %1748 = vmatprep.subr.bf16.mxu0 %v1992_v0 }
 0xb0f   :  { %1749 = vmatpush3.bf16.msra.mxu0 %v2070_v5 }
 0xbdd   :  { %v525_v44 = vpop.f32.mrb[12].mxu0 }
 0xbde   :  { %v531_v45 = vadd.f32 %v525_v44, %v144_v43  ;;  %v1736_v46 = vpop.f32.mrb[13].mxu0  ;;  %v1858_v44 = vld [vmem:[%s2386_s4] sm:$0xff]  }
 0xbdf   :  { %v528_v47 = vpop.f32.mrb[14].mxu0  ;;  %1762 = vmatprep.subr.bf16.mxu0 %v1858_v44 }
 0xbe0   :  { %1896 = vtanh.f32 %v531_v45  ;;  %v1737_v48 = vpop.f32.mrb[15].mxu0  ;;  %v1591_v50 = vmul.f32 -1.442695, %v531_v45 }
 0xbe1   :  { %v480_v48 = vrot.slane %v2161_v41, 4  ;;  %v2229_v41 = vld [vmem:[%s2387_s5 + $0x8] sm:$0xff]  }
 0xbe2   :  { %1898 = vpow2.f32 %v1591_v50 }
 0xbea   :  { %v1897_v49 = vpop.eup %1896 }
 0xbeb   :  { %541 = vrot.lane.b32.xlu0 %v1897_v49, %s1995_s19 }
 0xbec   :  { %v1899_v51 = vpop.eup %1898 }
 0xbed   :  { %v535_v52 = vadd.f32 1.0, %v1899_v51 }
 0xbef   :  { %1900 = vrcp.f32 %v535_v52 }
 0xbf9   :  { %v1901_v53 = vpop.eup %1900 }
 0xbfa   :  { %v539_v56 = vmul.f32 %v1901_v53, %v471_v37 }
 0xc5d   :  { %v542_v59 = vpop.permute.xlu0 %541 }
 0xc5e   :  { %v544_v60 = vmul.f32 %v1901_v53, %v542_v59  ;;  %v2221_v59 = vld [vmem:[%s2387_s5] sm:$0xff]  }
 0xc60   :  { %546 = vrot.lane.b32.xlu1 %v544_v60, %s1996_s3 }
 0xcd2   :  { %v547_v61 = vpop.permute.xlu1 %546 }
 0xcd3   :  { %v549_v62 = vadd.f32 %v547_v61, %v539_v56 }
 0xcd5   :  { %1902 = vtanh.f32 %v549_v62 }
 0xcdf   :  { %v1903_v63 = vpop.eup %1902 }
 0xce0   :  { %552 = vrot.lane.b32.xlu0 %v1903_v63, %s1995_s19 }
 0xd52   :  { %v553_v1 = vpop.permute.xlu0 %552 }
 0xd53   :  { %v555_v3 = vmul.f32 %v1901_v53, %v553_v1 }
 0xd55   :  { %v556_v4 = vpack.c.bf16 %v555_v3, %v555_v3 }
 0xd57   :  { %558 = vrot.lane.b32.xlu1 %v556_v4, %s1996_s3 }
 0xdc9   :  { %v559_v9 = vpop.permute.xlu1 %558 }
 0xdca   :  { %561 = vst.msk [vmem:[#allocation3 + $0x10] sm:$0xf] %vm253_vm2, %v559_v9  ;;  %1743 = vmatmul.mubr.msk.bf16.vlgmr.msra.gmra.mrb[12].mxu1 %vm179_vm3, %v559_v9 }
 0xdcb   :  { %1755 = vmatpush3.bf16.msra.mxu1 %v2056_v2  ;;  %1758 = vmatprep.mubr.msk.bf16.mxu1 %vm1993_vm0, %v1992_v0 }
 0xdcc   :  { %1756 = vmatprep.subr.bf16.mxu1 %v1992_v0 }
 0xdcf   :  { %1757 = vmatpush3.bf16.msra.mxu1 %v2070_v5 }
 0xdd0   :  { %1774 = vmatprep.subr.bf16.mxu1 %v1992_v0 }
 0xe9d   :  { %v600_v12 = vpop.f32.mrb[12].mxu1 }
 0xe9e   :  { %v606_v13 = vadd.f32 %v600_v12, %v147_v10  ;;  %v1744_v14 = vpop.f32.mrb[13].mxu1  ;;  %v2259_v12 = vld [vmem:[%s2388_s6] ss:$0 sm:$0xff] }
 0xe9f   :  { %v603_v15 = vpop.f32.mrb[14].mxu1 }
 0xea0   :  { %1904 = vtanh.f32 %v606_v13  ;;  %v1745_v8 = vpop.f32.mrb[15].mxu1  ;;  %v1593_v2 = vmul.f32 -1.442695, %v606_v13 }
 0xea2   :  { %1906 = vpow2.f32 %v1593_v2 }
 0xeaa   :  { %v1905_v16 = vpop.eup %1904 }
 0xeab   :  { %616 = vrot.lane.b32.xlu0 %v1905_v16, %s1995_s19 }
 0xeac   :  { %v1907_v17 = vpop.eup %1906 }
 0xead   :  { %v610_v18 = vadd.f32 1.0, %v1907_v17 }
 0xeaf   :  { %1908 = vrcp.f32 %v610_v18 }
 0xeb9   :  { %v1909_v5 = vpop.eup %1908 }
 0xeba   :  { %v614_v58 = vmul.f32 %v1909_v5, %v549_v62 }
 0xf1d   :  { %v617_v19 = vpop.permute.xlu0 %616 }
 0xf1e   :  { %v619_v20 = vmul.f32 %v1909_v5, %v617_v19 }
 0xf20   :  { %621 = vrot.lane.b32.xlu1 %v619_v20, %s1996_s3 }
 0xf92   :  { %v622_v21 = vpop.permute.xlu1 %621 }
 0xf93   :  { %v624_v22 = vadd.f32 %v622_v21, %v614_v58 }
 0xf95   :  { %1910 = vtanh.f32 %v624_v22 }
 0xf9f   :  { %v1911_v23 = vpop.eup %1910 }
 0xfa0   :  { %627 = vrot.lane.b32.xlu0 %v1911_v23, %s1995_s19 }
0x1012   :  { %v628_v24 = vpop.permute.xlu0 %627 }
0x1013   :  { %v630_v25 = vmul.f32 %v1909_v5, %v628_v24 }
0x1015   :  { %v2190_v26 = vpack.c.bf16 %v630_v25, %v630_v25 }
0x1017   :  { %639 = vrot.lane.b32.xlu1 %v2190_v26, %s1996_s3 }
0x1089   :  { %v640_v27 = vpop.permute.xlu1 %639 }
0x108a   :  { %1751 = vmatmul.mubr.msk.bf16.vlgmr.msra.gmra.mrb[16].mxu0 %vm179_vm3, %v640_v27 }
0x108b   :  { %1763 = vmatpush3.bf16.msra.mxu0 %v1858_v44 }
0x108c   :  { %1764 = vmatprep.subr.bf16.mxu0 %v1859_v54 }
0x108f   :  { %1765 = vmatpush3.bf16.msra.mxu0 %v1859_v54 }
0x1090   :  { %1790 = vmatprep.subr.bf16.mxu0 %v1992_v0 }
0x115d   :  { %v678_v29 = vpop.f32.mrb[16].mxu0 }
0x115e   :  { %v684_v30 = vadd.f32 %v678_v29, %v152_v28  ;;  %v1752_v31 = vpop.f32.mrb[17].mxu0 }
0x115f   :  { %v681_v32 = vpop.f32.mrb[18].mxu0 }
0x1160   :  { %1912 = vtanh.f32 %v684_v30  ;;  %v1753_v33 = vpop.f32.mrb[19].mxu0  ;;  %v1595_v35 = vmul.f32 -1.442695, %v684_v30 }
0x1162   :  { %1914 = vpow2.f32 %v1595_v35 }
0x116a   :  { %v1913_v34 = vpop.eup %1912 }
0x116b   :  { %694 = vrot.lane.b32.xlu0 %v1913_v34, %s1995_s19 }
0x116c   :  { %v1915_v11 = vpop.eup %1914 }
0x116d   :  { %v688_v36 = vadd.f32 1.0, %v1915_v11 }
0x116f   :  { %1916 = vrcp.f32 %v688_v36 }
0x1179   :  { %v1917_v37 = vpop.eup %1916 }
0x117a   :  { %v692_v40 = vmul.f32 %v1917_v37, %v624_v22 }
0x11dd   :  { %v695_v38 = vpop.permute.xlu0 %694 }
0x11de   :  { %v697_v39 = vmul.f32 %v1917_v37, %v695_v38 }
0x11e0   :  { %699 = vrot.lane.b32.xlu1 %v697_v39, %s1996_s3  ;;  %v633_v39 = vrot.slane %v2190_v26, 4 }
0x11e4   :  { %327 = vrot.lane.b32.xlu1 %v326_v55, %s1996_s3 }
0x1252   :  { %v700_v42 = vpop.permute.xlu1 %699 }
0x1253   :  { %v2201_v43 = vadd.f32 %v700_v42, %v692_v40 }
0x1255   :  { %1918 = vtanh.f32 %v2201_v43 }
0x1256   :  { %v328_v45 = vpop.permute.xlu1 %327 }
0x1257   :  { %331 = vst.msk [vmem:[#allocation3] sm:$0xf0] %vm330_vm4, %v328_v45 }
0x125e   :  { %v800_v46 = vld [vmem:[#allocation3] sm:$0xff] }
0x125f   :  { %v1919_v47 = vpop.eup %1918  ;;  %1766 = vmatprep.mubr.msk.bf16.mxu0 %vm179_vm3, %v800_v46 }
0x1260   :  { %705 = vrot.lane.b32.xlu0 %v1919_v47, %s1995_s19 }
0x1264   :  { %481 = vrot.lane.b32.xlu0 %v480_v48, %s1996_s3 }
0x12d2   :  { %v706_v49 = vpop.permute.xlu0 %705 }
0x12d3   :  { %v708_v50 = vmul.f32 %v1917_v37, %v706_v49 }
0x12d5   :  { %v709_v51 = vpack.c.bf16 %v708_v50, %v708_v50 }
0x12d6   :  { %v482_v52 = vpop.permute.xlu0 %481 }
0x12d7   :  { %484 = vst.msk [vmem:[#allocation3 + $0x8] sm:$0xf0] %vm330_vm4, %v482_v52  ;;  %711 = vrot.lane.b32.xlu1 %v709_v51, %s1996_s3 }
0x12de   :  { %v801_v53 = vld [vmem:[#allocation3 + $0x8] sm:$0xff] }
0x12df   :  { %1767 = vmatmul.mubr.msk.bf16.vlgmr.msra.gmra.mrb[20].mxu0 %vm179_vm3, %v801_v53 }
0x12e0   :  { %1791 = vmatpush3.bf16.msra.mxu0 %v2221_v59 }
0x12e1   :  { %1792 = vmatprep.subr.bf16.mxu0 %v1992_v0 }
0x12e4   :  { %1793 = vmatpush3.bf16.msra.mxu0 %v2229_v41 }
0x12e5   :  { %1806 = vmatprep.subr.bf16.mxu0 %v1992_v0 }
0x1349   :  { %v712_v60 = vpop.permute.xlu1 %711 }
0x134a   :  { %714 = vst.msk [vmem:[#allocation3 + $0x18] sm:$0xf] %vm253_vm2, %v712_v60  ;;  %1759 = vmatmul.mubr.msk.bf16.vlgmr.msra.gmra.mrb[16].mxu1 %vm179_vm3, %v712_v60 }
0x134b   :  { %1775 = vmatpush3.bf16.msra.mxu1 %v2221_v59  ;;  %1778 = vmatprep.mubr.msk.bf16.mxu1 %vm1993_vm0, %v1992_v0 }
0x134c   :  { %1776 = vmatprep.subr.bf16.mxu1 %v1992_v0 }
0x134f   :  { %1777 = vmatpush3.bf16.msra.mxu1 %v2229_v41 }
0x1350   :  { %1782 = vmatprep.subr.bf16.mxu1 %v1992_v0 }
0x1352   :  { %1779 = vmatmul.mubr.bf16.vlgmr.msra.gmra.mrb[20].mxu1 %v1994_v6  ;;  %v155_v6 = vadd.f32 %v2131_v57, %v2090_v7 }
0x1353   :  { %1783 = vmatpush3.bf16.msra.mxu1 %v2221_v59  ;;  %1786 = vmatprep.mubr.msk.bf16.mxu1 %vm1993_vm0, %v1992_v0 }
0x1354   :  { %1784 = vmatprep.subr.bf16.mxu1 %v1992_v0 }
0x1357   :  { %1785 = vmatpush3.bf16.msra.mxu1 %v2229_v41 }
0x1358   :  { %1798 = vmatprep.subr.bf16.mxu1 %v1992_v0 }
0x13b2   :  { %v2248_v56 = vpop.f32.mrb[20].mxu0 }
0x13b3   :  { %v868_v61 = vpop.f32.mrb[21].mxu0 }
0x13b4   :  { %v2250_v62 = vpop.f32.mrb[22].mxu0  ;;  %v869_v13 = vadd.f32 %v2259_v12, %v868_v61 }
0x13b5   :  { %v2252_v63 = vpop.f32.mrb[23].mxu0 }
0x141d   :  { %v753_v1 = vpop.f32.mrb[16].mxu1 }
0x141e   :  { %v759_v3 = vadd.f32 %v753_v1, %v155_v6  ;;  %v1760_v4 = vpop.f32.mrb[17].mxu1 }
0x141f   :  { %v756_v9 = vpop.f32.mrb[18].mxu1 }
0x1420   :  { %v1761_v10 = vpop.f32.mrb[19].mxu1  ;;  %v1597_v25 = vmul.f32 -1.442695, %v759_v3 }
0x1425   :  { %v954_v14 = vpop.f32.mrb[20].mxu1 }
0x1426   :  { %v960_v15 = vadd.f32 %v954_v14, %v869_v13  ;;  %v1780_v8 = vpop.f32.mrb[21].mxu1 }
0x1427   :  { %v957_v16 = vpop.f32.mrb[22].mxu1 }
0x1428   :  { %1920 = vtanh.f32 %v960_v15  ;;  %v1781_v2 = vpop.f32.mrb[23].mxu1  ;;  %v1607_v7 = vmul.f32 -1.442695, %v960_v15 }
0x142a   :  { %1922 = vpow2.f32 %v1607_v7 }
0x1432   :  { %v1921_v17 = vpop.eup %1920 }
0x1433   :  { %970 = vrot.lane.b32.xlu0 %v1921_v17, %s1995_s19 }
0x1434   :  { %v1923_v57 = vpop.eup %1922 }
0x1435   :  { %v964_v18 = vadd.f32 1.0, %v1923_v57  ;;  %v877_v57 = vadd.f32 %v2248_v56, %v2259_v12 }
0x1437   :  { %1924 = vrcp.f32 %v964_v18 }
0x1441   :  { %v1925_v5 = vpop.eup %1924 }
0x1442   :  { %v968_v58 = vmul.f32 0.0, %v1925_v5 }
0x14a5   :  { %v971_v19 = vpop.permute.xlu0 %970 }
0x14a6   :  { %v973_v20 = vmul.f32 %v1925_v5, %v971_v19 }
0x14a8   :  { %975 = vrot.lane.b32.xlu1 %v973_v20, %s1996_s3 }
0x151a   :  { %v976_v21 = vpop.permute.xlu1 %975 }
0x151b   :  { %v978_v22 = vadd.f32 %v976_v21, %v968_v58 }
0x151d   :  { %1926 = vtanh.f32 %v978_v22 }
0x151e   :  { %1928 = vtanh.f32 %v759_v3 }
0x151f   :  { %1930 = vpow2.f32 %v1597_v25 }
0x1527   :  { %v1927_v23 = vpop.eup %1926 }
0x1528   :  { %981 = vrot.lane.b32.xlu0 %v1927_v23, %s1995_s19  ;;  %v1929_v24 = vpop.eup %1928 }
0x1529   :  { %v1931_v27 = vpop.eup %1930 }
0x152a   :  { %v763_v28 = vadd.f32 1.0, %v1931_v27 }
0x152c   :  { %769 = vrot.lane.b32.xlu0 %v1929_v24, %s1995_s19  ;;  %1932 = vrcp.f32 %v763_v28 }
0x1536   :  { %v1933_v32 = vpop.eup %1932 }
0x1537   :  { %v767_v11 = vmul.f32 %v1933_v32, %v2201_v43  ;;  %v872_v43 = vadd.f32 %v2259_v12, %v2252_v63 }
0x159a   :  { %v982_v29 = vpop.permute.xlu0 %981 }
0x159b   :  { %v984_v30 = vmul.f32 %v1925_v5, %v982_v29 }
0x159d   :  { %v986_v31 = vpack.c.bf16 %v984_v30, %v984_v30 }
0x159e   :  { %v770_v33 = vpop.permute.xlu0 %769 }
0x159f   :  { %v772_v34 = vmul.f32 %v1933_v32, %v770_v33  ;;  %988 = vrot.lane.b32.xlu1 %v986_v31, %s1996_s3 }
0x15a1   :  { %774 = vrot.lane.b32.xlu0 %v772_v34, %s1996_s3 }
0x1611   :  { %v989_v35 = vpop.permute.xlu1 %988 }
0x1612   :  { %1787 = vmatmul.mubr.msk.bf16.vlgmr.msra.gmra.mrb[24].mxu1 %vm179_vm3, %v989_v35 }
0x1613   :  { %v775_v36 = vpop.permute.xlu0 %774  ;;  %1799 = vmatpush3.bf16.msra.mxu1 %v2221_v59  ;;  %1802 = vmatprep.mubr.msk.bf16.mxu1 %vm1993_vm0, %v1992_v0 }
0x1614   :  { %v777_v37 = vadd.f32 %v775_v36, %v767_v11  ;;  %1800 = vmatprep.subr.bf16.mxu1 %v1992_v0  ;;  %v880_v11 = vadd.f32 %v2250_v62, %v2259_v12 }
0x1616   :  { %1934 = vtanh.f32 %v777_v37 }
0x1617   :  { %1801 = vmatpush3.bf16.msra.mxu1 %v2229_v41 }
0x1618   :  { %1814 = vmatprep.subr.bf16.mxu1 %v1992_v0 }
0x1620   :  { %v1935_v38 = vpop.eup %1934 }
0x1621   :  { %780 = vrot.lane.b32.xlu0 %v1935_v38, %s1995_s19 }
0x1625   :  { %634 = vrot.lane.b32.xlu0 %v633_v39, %s1996_s3 }
0x1693   :  { %v781_v55 = vpop.permute.xlu0 %780 }
0x1694   :  { %v783_v6 = vmul.f32 %v1933_v32, %v781_v55 }
0x1696   :  { %v784_v1 = vpack.c.bf16 %v783_v6, %v783_v6 }
0x1697   :  { %v635_v40 = vpop.permute.xlu0 %634 }
0x1698   :  { %637 = vst.msk [vmem:[#allocation3 + $0x10] sm:$0xf0] %vm330_vm4, %v635_v40  ;;  %v786_v4 = vrot.slane %v784_v1, 4 }
0x169f   :  { %v802_v42 = vld [vmem:[#allocation3 + $0x10] sm:$0xff] }
0x16a0   :  { %1770 = vmatprep.mubr.msk.bf16.mxu0 %vm179_vm3, %v802_v42 }
0x16e5   :  { %v1027_v44 = vpop.f32.mrb[24].mxu1 }
0x16e6   :  { %v1033_v45 = vadd.f32 %v1027_v44, %v872_v43  ;;  %v1788_v54 = vpop.f32.mrb[25].mxu1 }
0x16e7   :  { %v1030_v46 = vpop.f32.mrb[26].mxu1 }
0x16e8   :  { %1936 = vtanh.f32 %v1033_v45  ;;  %v1789_v47 = vpop.f32.mrb[27].mxu1  ;;  %v1609_v26 = vmul.f32 -1.442695, %v1033_v45 }
0x16ea   :  { %1938 = vpow2.f32 %v1609_v26 }
0x16f2   :  { %v1937_v48 = vpop.eup %1936 }
0x16f3   :  { %1043 = vrot.lane.b32.xlu1 %v1937_v48, %s1995_s19 }
0x16f4   :  { %v1939_v49 = vpop.eup %1938 }
0x16f5   :  { %v1037_v50 = vadd.f32 1.0, %v1939_v49 }
0x16f7   :  { %1940 = vrcp.f32 %v1037_v50 }
0x1701   :  { %v1941_v51 = vpop.eup %1940 }
0x1702   :  { %v1041_v60 = vmul.f32 %v1941_v51, %v978_v22 }
0x1765   :  { %v1044_v52 = vpop.permute.xlu1 %1043 }
0x1766   :  { %v1046_v53 = vmul.f32 %v1941_v51, %v1044_v52 }
0x1768   :  { %1048 = vrot.lane.b32.xlu1 %v1046_v53, %s1996_s3 }
0x17da   :  { %v1049_v61 = vpop.permute.xlu1 %1048 }
0x17db   :  { %v1051_v63 = vadd.f32 %v1049_v61, %v1041_v60 }
0x17dd   :  { %1942 = vtanh.f32 %v1051_v63 }
0x17e7   :  { %v1943_v3 = vpop.eup %1942 }
0x17e8   :  { %1054 = vrot.lane.b32.xlu1 %v1943_v3, %s1995_s19 }
0x17ec   :  { %787 = vrot.lane.b32.xlu1 %v786_v4, %s1996_s3 }
0x185a   :  { %v1055_v9 = vpop.permute.xlu1 %1054 }
0x185b   :  { %v1057_v10 = vmul.f32 %v1941_v51, %v1055_v9 }
0x185d   :  { %v1059_v13 = vpack.c.bf16 %v1057_v10, %v1057_v10 }
0x185e   :  { %v788_v14 = vpop.permute.xlu1 %787 }
0x185f   :  { %790 = vst.msk [vmem:[#allocation3 + $0x18] sm:$0xf0] %vm330_vm4, %v788_v14  ;;  %1061 = vrot.lane.b32.xlu0 %v1059_v13, %s1996_s3 }
0x1866   :  { %v803_v15 = vld [vmem:[#allocation3 + $0x18] sm:$0xff] }
0x1867   :  { %1771 = vmatmul.mubr.msk.bf16.gmra.mrb[24].mxu0 %vm179_vm3, %v803_v15 }
0x1868   :  { %1794 = vmatprep.mubr.msk.bf16.mxu0 %vm1993_vm0, %v1992_v0 }
0x18d1   :  { %v1062_v8 = vpop.permute.xlu0 %1061 }
0x18d2   :  { %1795 = vmatmul.mubr.msk.bf16.vlgmr.msra.gmra.mrb[28].mxu0 %vm179_vm3, %v1062_v8 }
0x18d3   :  { %1807 = vmatpush3.bf16.msra.mxu0 %v2221_v59  ;;  %1810 = vmatprep.mubr.msk.bf16.mxu0 %vm1993_vm0, %v1992_v0 }
0x18d4   :  { %1808 = vmatprep.subr.bf16.mxu0 %v1992_v0 }
0x18d7   :  { %1809 = vmatpush3.bf16.msra.mxu0 %v2229_v41 }
0x18d8   :  { %1822 = vmatprep.subr.bf16.mxu0 %v1992_v0 }
0x193a   :  { %v2299_v16 = vpop.f32.mrb[24].mxu0 }
0x193b   :  { %v2301_v2 = vpop.f32.mrb[25].mxu0 }
0x193c   :  { %v2303_v17 = vpop.f32.mrb[26].mxu0  ;;  %v885_v53 = vadd.f32 %v2259_v12, %v2301_v2 }
0x193d   :  { %v2305_v7 = vpop.f32.mrb[27].mxu0 }
0x19a5   :  { %v1100_v18 = vpop.f32.mrb[28].mxu0 }
0x19a6   :  { %v1106_v5 = vadd.f32 %v1100_v18, %v877_v57  ;;  %v1796_v19 = vpop.f32.mrb[29].mxu0 }
0x19a7   :  { %v1103_v20 = vpop.f32.mrb[30].mxu0 }
0x19a8   :  { %1944 = vtanh.f32 %v1106_v5  ;;  %v1797_v58 = vpop.f32.mrb[31].mxu0  ;;  %v1611_v22 = vmul.f32 -1.442695, %v1106_v5 }
0x19aa   :  { %1946 = vpow2.f32 %v1611_v22 }
0x19b2   :  { %v1945_v21 = vpop.eup %1944 }
0x19b3   :  { %1116 = vrot.lane.b32.xlu1 %v1945_v21, %s1995_s19  ;;  %v888_v21 = vadd.f32 %v2259_v12, %v2305_v7 }
0x19b4   :  { %v1947_v23 = vpop.eup %1946 }
0x19b5   :  { %v1110_v24 = vadd.f32 1.0, %v1947_v23 }
0x19b7   :  { %1948 = vrcp.f32 %v1110_v24 }
0x19c1   :  { %v1949_v25 = vpop.eup %1948 }
0x19c2   :  { %v1114_v56 = vmul.f32 %v1949_v25, %v1051_v63 }
0x1a25   :  { %v1117_v27 = vpop.permute.xlu1 %1116 }
0x1a26   :  { %v1119_v28 = vmul.f32 %v1949_v25, %v1117_v27 }
0x1a28   :  { %1121 = vrot.lane.b32.xlu0 %v1119_v28, %s1996_s3 }
0x1a9a   :  { %v1122_v29 = vpop.permute.xlu0 %1121 }
0x1a9b   :  { %v1124_v30 = vadd.f32 %v1122_v29, %v1114_v56 }
0x1a9d   :  { %1950 = vtanh.f32 %v1124_v30 }
0x1aa7   :  { %v1951_v31 = vpop.eup %1950 }
0x1aa8   :  { %1127 = vrot.lane.b32.xlu1 %v1951_v31, %s1995_s19 }
0x1b1a   :  { %v1128_v32 = vpop.permute.xlu1 %1127 }
0x1b1b   :  { %v1130_v33 = vmul.f32 %v1949_v25, %v1128_v32 }
0x1b1d   :  { %v1132_v34 = vpack.c.bf16 %v1130_v33, %v1130_v33 }
0x1b1f   :  { %1134 = vrot.lane.b32.xlu0 %v1132_v34, %s1996_s3 }
0x1b91   :  { %v1135_v35 = vpop.permute.xlu0 %1134 }
0x1b92   :  { %1803 = vmatmul.mubr.msk.bf16.vlgmr.msra.gmra.mrb[28].mxu1 %vm179_vm3, %v1135_v35 }
0x1b93   :  { %1815 = vmatpush3.bf16.msra.mxu1 %v2221_v59  ;;  %1818 = vmatprep.mubr.msk.bf16.mxu1 %vm1993_vm0, %v1992_v0 }
0x1b94   :  { %1816 = vmatprep.subr.bf16.mxu1 %v1992_v0 }
0x1b97   :  { %1817 = vmatpush3.bf16.msra.mxu1 %v2229_v41 }
0x1b98   :  { %1830 = vmatprep.subr.bf16.mxu1 %v1992_v0 }
0x1c65   :  { %v1173_v36 = vpop.f32.mrb[28].mxu1 }
0x1c66   :  { %v1179_v37 = vadd.f32 %v1173_v36, %v880_v11  ;;  %v1804_v38 = vpop.f32.mrb[29].mxu1 }
0x1c67   :  { %v1176_v39 = vpop.f32.mrb[30].mxu1  ;;  %v893_v38 = vadd.f32 %v2299_v16, %v2259_v12 }
0x1c68   :  { %1952 = vtanh.f32 %v1179_v37  ;;  %v1805_v55 = vpop.f32.mrb[31].mxu1  ;;  %v1613_v42 = vmul.f32 -1.442695, %v1179_v37 }
0x1c6a   :  { %1954 = vpow2.f32 %v1613_v42 }
0x1c72   :  { %v1953_v40 = vpop.eup %1952 }
0x1c73   :  { %1189 = vrot.lane.b32.xlu1 %v1953_v40, %s1995_s19 }
0x1c74   :  { %v1955_v43 = vpop.eup %1954 }
0x1c75   :  { %v1183_v44 = vadd.f32 1.0, %v1955_v43 }
0x1c77   :  { %1956 = vrcp.f32 %v1183_v44 }
0x1c81   :  { %v1957_v45 = vpop.eup %1956 }
0x1c82   :  { %v1187_v62 = vmul.f32 %v1957_v45, %v1124_v30 }
0x1ce5   :  { %v1190_v54 = vpop.permute.xlu1 %1189 }
0x1ce6   :  { %v1192_v46 = vmul.f32 %v1957_v45, %v1190_v54 }
0x1ce8   :  { %1194 = vrot.lane.b32.xlu0 %v1192_v46, %s1996_s3 }
0x1d5a   :  { %v1195_v47 = vpop.permute.xlu0 %1194 }
0x1d5b   :  { %v1197_v48 = vadd.f32 %v1195_v47, %v1187_v62 }
0x1d5d   :  { %1958 = vtanh.f32 %v1197_v48 }
0x1d67   :  { %v1959_v26 = vpop.eup %1958 }
0x1d68   :  { %1200 = vrot.lane.b32.xlu1 %v1959_v26, %s1995_s19 }
0x1dda   :  { %v1201_v49 = vpop.permute.xlu1 %1200 }
0x1ddb   :  { %v1203_v50 = vmul.f32 %v1957_v45, %v1201_v49 }
0x1ddd   :  { %v1205_v51 = vpack.c.bf16 %v1203_v50, %v1203_v50 }
0x1ddf   :  { %1207 = vrot.lane.b32.xlu0 %v1205_v51, %s1996_s3 }
0x1e51   :  { %v1208_v52 = vpop.permute.xlu0 %1207 }
0x1e52   :  { %1811 = vmatmul.mubr.msk.bf16.vlgmr.msra.gmra.mrb[32].mxu0 %vm179_vm3, %v1208_v52 }
0x1e53   :  { %1823 = vmatpush3.bf16.msra.mxu0 %v2221_v59  ;;  %1826 = vmatprep.mubr.msk.bf16.mxu0 %vm1993_vm0, %v1992_v0 }
0x1e54   :  { %1824 = vmatprep.subr.bf16.mxu0 %v1992_v0 }
0x1e57   :  { %1825 = vmatpush3.bf16.msra.mxu0 %v2229_v41 }
0x1e58   :  { %1838 = vmatprep.subr.bf16.mxu0 %v1992_v0 }
0x1f25   :  { %v1246_v60 = vpop.f32.mrb[32].mxu0 }
0x1f26   :  { %v1252_v61 = vadd.f32 %v1246_v60, %v885_v53  ;;  %v1812_v63 = vpop.f32.mrb[33].mxu0 }
0x1f27   :  { %v1249_v6 = vpop.f32.mrb[34].mxu0 }
0x1f28   :  { %1960 = vtanh.f32 %v1252_v61  ;;  %v1813_v1 = vpop.f32.mrb[35].mxu0  ;;  %v1615_v4 = vmul.f32 -1.442695, %v1252_v61  ;;  %v896_v61 = vadd.f32 %v2303_v17, %v2259_v12 }
0x1f2a   :  { %1962 = vpow2.f32 %v1615_v4 }
0x1f32   :  { %v1961_v3 = vpop.eup %1960 }
0x1f33   :  { %1262 = vrot.lane.b32.xlu1 %v1961_v3, %s1995_s19 }
0x1f34   :  { %v1963_v9 = vpop.eup %1962 }
0x1f35   :  { %v1256_v10 = vadd.f32 1.0, %v1963_v9 }
0x1f37   :  { %1964 = vrcp.f32 %v1256_v10 }
0x1f41   :  { %v1965_v13 = vpop.eup %1964 }
0x1f42   :  { %v1260_v8 = vmul.f32 %v1965_v13, %v1197_v48 }
0x1fa5   :  { %v1263_v14 = vpop.permute.xlu1 %1262 }
0x1fa6   :  { %v1265_v15 = vmul.f32 %v1965_v13, %v1263_v14 }
0x1fa8   :  { %1267 = vrot.lane.b32.xlu0 %v1265_v15, %s1996_s3 }
0x201a   :  { %v1268_v2 = vpop.permute.xlu0 %1267 }
0x201b   :  { %v1270_v57 = vadd.f32 %v1268_v2, %v1260_v8 }
0x201d   :  { %1966 = vtanh.f32 %v1270_v57 }
0x2027   :  { %v1967_v18 = vpop.eup %1966 }
0x2028   :  { %1273 = vrot.lane.b32.xlu1 %v1967_v18, %s1995_s19  ;;  %v1862_v18 = vld [vmem:[%s2389_s7] sm:$0xff]  }
0x209a   :  { %v1274_v5 = vpop.permute.xlu1 %1273 }
0x209b   :  { %v1276_v19 = vmul.f32 %v1965_v13, %v1274_v5  ;;  %v1863_v5 = vld [vmem:[%s2389_s7 + $0x8] sm:$0xff]  }
0x209d   :  { %v1278_v20 = vpack.c.bf16 %v1276_v19, %v1276_v19 }
0x209f   :  { %1280 = vrot.lane.b32.xlu0 %v1278_v20, %s1996_s3 }
0x2111   :  { %v1281_v58 = vpop.permute.xlu0 %1280 }
0x2112   :  { %1819 = vmatmul.mubr.msk.bf16.vlgmr.msra.gmra.mrb[32].mxu1 %vm179_vm3, %v1281_v58 }
0x2113   :  { %1831 = vmatpush3.bf16.msra.mxu1 %v2221_v59  ;;  %1834 = vmatprep.mubr.msk.bf16.mxu1 %vm1993_vm0, %v1992_v0 }
0x2114   :  { %1832 = vmatprep.subr.bf16.mxu1 %v1992_v0 }
0x2117   :  { %1833 = vmatpush3.bf16.msra.mxu1 %v2229_v41 }
0x21e5   :  { %v1319_v22 = vpop.f32.mrb[32].mxu1 }
0x21e6   :  { %v1325_v23 = vadd.f32 %v1319_v22, %v888_v21  ;;  %v1820_v24 = vpop.f32.mrb[33].mxu1 }
0x21e7   :  { %v1322_v25 = vpop.f32.mrb[34].mxu1 }
0x21e8   :  { %1968 = vtanh.f32 %v1325_v23  ;;  %v1821_v27 = vpop.f32.mrb[35].mxu1  ;;  %v1617_v59 = vmul.f32 -1.442695, %v1325_v23  ;;  %v1622_v23 = vld [vmem:[%s2390_s8] ss:$0 sm:$0xff] }
0x21ea   :  { %1970 = vpow2.f32 %v1617_v59 }
0x21f2   :  { %v1969_v28 = vpop.eup %1968 }
0x21f3   :  { %1335 = vrot.lane.b32.xlu1 %v1969_v28, %s1995_s19 }
0x21f4   :  { %v1971_v56 = vpop.eup %1970 }
0x21f5   :  { %v1329_v29 = vadd.f32 1.0, %v1971_v56 }
0x21f7   :  { %1972 = vrcp.f32 %v1329_v29 }
0x2201   :  { %v1973_v30 = vpop.eup %1972 }
0x2202   :  { %v1333_v7 = vmul.f32 %v1973_v30, %v1270_v57 }
0x2265   :  { %v1336_v31 = vpop.permute.xlu1 %1335 }
0x2266   :  { %v1338_v41 = vmul.f32 %v1973_v30, %v1336_v31 }
0x2268   :  { %1340 = vrot.lane.b32.xlu0 %v1338_v41, %s1996_s3 }
0x22da   :  { %v1341_v32 = vpop.permute.xlu0 %1340 }
0x22db   :  { %v1343_v33 = vadd.f32 %v1341_v32, %v1333_v7 }
0x22dd   :  { %1974 = vtanh.f32 %v1343_v33 }
0x22e7   :  { %v1975_v34 = vpop.eup %1974 }
0x22e8   :  { %1346 = vrot.lane.b32.xlu1 %v1975_v34, %s1995_s19 }
0x235a   :  { %v1347_v35 = vpop.permute.xlu1 %1346 }
0x235b   :  { %v1349_v11 = vmul.f32 %v1973_v30, %v1347_v35 }
0x235d   :  { %v1351_v36 = vpack.c.bf16 %v1349_v11, %v1349_v11 }
0x235f   :  { %1353 = vrot.lane.b32.xlu0 %v1351_v36, %s1996_s3 }
0x23d1   :  { %v1354_v37 = vpop.permute.xlu0 %1353 }
0x23d2   :  { %1827 = vmatmul.mubr.msk.bf16.vlgmr.msra.gmra.mrb[36].mxu0 %vm179_vm3, %v1354_v37 }
0x23d3   :  { %1842 = vmatprep.mubr.msk.bf16.mxu0 %vm1993_vm0, %v1992_v0  ;;  %1839 = vmatpush3.bf16.msra.mxu0 %v1862_v18 }
0x23d4   :  { %1840 = vmatprep.subr.bf16.mxu0 %v1992_v0 }
0x23d7   :  { %1841 = vmatpush3.bf16.msra.mxu0 %v1863_v5 }
0x24a5   :  { %v1392_v39 = vpop.f32.mrb[36].mxu0 }
0x24a6   :  { %v1398_v55 = vadd.f32 %v1392_v39, %v893_v38  ;;  %v1828_v40 = vpop.f32.mrb[37].mxu0 }
0x24a7   :  { %v1395_v42 = vpop.f32.mrb[38].mxu0 }
0x24a8   :  { %1976 = vtanh.f32 %v1398_v55  ;;  %v1829_v43 = vpop.f32.mrb[39].mxu0  ;;  %v1619_v45 = vmul.f32 -1.442695, %v1398_v55 }
0x24aa   :  { %1978 = vpow2.f32 %v1619_v45 }
0x24b2   :  { %v1977_v44 = vpop.eup %1976 }
0x24b3   :  { %1408 = vrot.lane.b32.xlu1 %v1977_v44, %s1995_s19 }
0x24b4   :  { %v1979_v54 = vpop.eup %1978 }
0x24b5   :  { %v1402_v46 = vadd.f32 1.0, %v1979_v54 }
0x24b7   :  { %1980 = vrcp.f32 %v1402_v46 }
0x24c1   :  { %v1981_v62 = vpop.eup %1980 }
0x24c2   :  { %v1406_v16 = vmul.f32 %v1981_v62, %v1343_v33 }
0x2525   :  { %v1409_v47 = vpop.permute.xlu1 %1408 }
0x2526   :  { %v1411_v48 = vmul.f32 %v1981_v62, %v1409_v47 }
0x2528   :  { %1413 = vrot.lane.b32.xlu0 %v1411_v48, %s1996_s3 }
0x259a   :  { %v1414_v26 = vpop.permute.xlu0 %1413 }
0x259b   :  { %v1416_v49 = vadd.f32 %v1414_v26, %v1406_v16 }
0x259d   :  { %1982 = vtanh.f32 %v1416_v49 }
0x25a7   :  { %v1983_v50 = vpop.eup %1982 }
0x25a8   :  { %1419 = vrot.lane.b32.xlu1 %v1983_v50, %s1995_s19 }
0x261a   :  { %v1420_v51 = vpop.permute.xlu1 %1419 }
0x261b   :  { %v1422_v52 = vmul.f32 %v1981_v62, %v1420_v51 }
0x261d   :  { %v1424_v53 = vpack.c.bf16 %v1422_v52, %v1422_v52 }
0x261f   :  { %1426 = vrot.lane.b32.xlu0 %v1424_v53, %s1996_s3 }
0x2691   :  { %v1427_v60 = vpop.permute.xlu0 %1426 }
0x2692   :  { %1835 = vmatmul.mubr.msk.bf16.vlgmr.msra.gmra.mrb[36].mxu1 %vm179_vm3, %v1427_v60 }
0x2765   :  { %v1465_v63 = vpop.f32.mrb[36].mxu1 }
0x2766   :  { %v1471_v6 = vadd.f32 %v1465_v63, %v896_v61  ;;  %v1836_v1 = vpop.f32.mrb[37].mxu1 }
0x2767   :  { %v1468_v3 = vpop.f32.mrb[38].mxu1 }
0x2768   :  { %1984 = vtanh.f32 %v1471_v6  ;;  %v1837_v4 = vpop.f32.mrb[39].mxu1  ;;  %v1621_v10 = vmul.f32 -1.442695, %v1471_v6 }
0x276a   :  { %1986 = vpow2.f32 %v1621_v10 }
0x2772   :  { %v1985_v9 = vpop.eup %1984 }
0x2773   :  { %1481 = vrot.lane.b32.xlu1 %v1985_v9, %s1995_s19 }
0x2774   :  { %v1987_v13 = vpop.eup %1986 }
0x2775   :  { %v1475_v14 = vadd.f32 1.0, %v1987_v13 }
0x2777   :  { %1988 = vrcp.f32 %v1475_v14 }
0x2781   :  { %v1989_v15 = vpop.eup %1988 }
0x2782   :  { %v1479_v12 = vmul.f32 %v1989_v15, %v1416_v49 }
0x27e5   :  { %v1482_v8 = vpop.permute.xlu1 %1481 }
0x27e6   :  { %v1484_v2 = vmul.f32 %v1989_v15, %v1482_v8 }
0x27e8   :  { %1486 = vrot.lane.b32.xlu0 %v1484_v2, %s1996_s3 }
0x285a   :  { %v1487_v17 = vpop.permute.xlu0 %1486 }
0x285b   :  { %v1489_v57 = vadd.f32 %v1487_v17, %v1479_v12 }
0x285d   :  { %1990 = vtanh.f32 %v1489_v57 }
0x2867   :  { %v1991_v19 = vpop.eup %1990 }
0x2868   :  { %1492 = vrot.lane.b32.xlu1 %v1991_v19, %s1995_s19 }
0x28da   :  { %v1493_v20 = vpop.permute.xlu1 %1492 }
0x28db   :  { %v1495_v58 = vmul.f32 %v1989_v15, %v1493_v20 }
0x28dd   :  { %v1496_v21 = vpack.c.bf16 %v1495_v58, %v1495_v58 }
0x28df   :  { %1509 = vrot.lane.b32.xlu0 %v1496_v21, %s1996_s3 }
0x2951   :  { %v1510_v22 = vpop.permute.xlu0 %1509 }
0x2952   :  { %1843 = vmatmul.mubr.msk.bf16.vlgmr.msra.gmra.mrb[40].mxu0 %vm179_vm3, %v1510_v22 }
0x2a25   :  { %v1560_v24 = vpop.f32.mrb[40].mxu0 }
0x2a26   :  { %v1561_v25 = vadd.f32 %v1622_v23, %v1560_v24  ;;  %v1844_v27 = vpop.f32.mrb[41].mxu0 }
0x2a27   :  { %v1563_v0 = vpop.f32.mrb[42].mxu0 }
0x2a28   :  { %1566 = vst.msk [vmem:[%s2391_s9] sm:$0xff] %vm80_vm1, %v1561_v25  ;;  %v1845_v28 = vpop.f32.mrb[43].mxu0 }

</bundles_post_ra>
